<compile_context>
chip_gen: v7x
topology: tpu7x:2x2x1
jax: 0.10.0
libtpu: 0.0.40
codegen_flags: <defaults>
</compile_context>

<pallas_src>
import functools

import jax
import jax.numpy as jnp
from jax.experimental import pallas as pl
from jax.experimental.pallas import tpu as pltpu


LANE = 128  # TPU lane width; logits are padded to a multiple of this.


# -----------------------------------------------------------------------------
# Pallas kernel: per-batch-element  BN-affine -> conv1d(k=5,p=2) -> ReLU ->
#                conv1d(k=3,p=1)
# -----------------------------------------------------------------------------
def _simpleconv_kernel(x_ref, scale_ref, shift_ref, w1_ref, b1_ref,
                       w2_ref, b2_ref, o_ref):
    # x_ref:     (1, L, H)     bf16, one batch element (channels-last)
    # scale/shift: (1, H)      f32 folded BatchNorm1d per-channel affine
    # w1_ref:    (5, H, HID)   bf16 conv1 taps ; b1_ref: (1, HID)  f32
    # w2_ref:    (3, HID, NLP) bf16 conv2 taps ; b2_ref: (1, NLP)  f32
    # o_ref:     (1, L, NLP)   f32 logits (NLP = num_labels padded to 128)
    x = x_ref[0]                                   # (L, H) bf16
    L = x.shape[0]

    # BatchNorm1d (folded per-channel scale/shift), computed in f32.
    xn = x.astype(jnp.float32) * scale_ref[...] + shift_ref[...]   # (L, H) f32

    # Conv1d(H -> HID, kernel=5, padding=2): sum of 5 shifted matmuls.
    zp1 = jnp.zeros((2, xn.shape[1]), jnp.float32)
    xp = jnp.concatenate([zp1, xn, zp1], axis=0)                   # (L+4, H)
    acc1 = jnp.dot(xp[0:L].astype(jnp.bfloat16), w1_ref[0],
                   preferred_element_type=jnp.float32) + b1_ref[...]
    for t in range(1, 5):                                          # static unroll
        acc1 = acc1 + jnp.dot(xp[t:t + L].astype(jnp.bfloat16), w1_ref[t],
                              preferred_element_type=jnp.float32)

    # ReLU (Dropout p=0.0 is identity).
    h = jnp.maximum(acc1, 0.0)                                     # (L, HID) f32

    # Conv1d(HID -> NLP, kernel=3, padding=1): lane-dense N (padded labels).
    zp2 = jnp.zeros((1, h.shape[1]), jnp.float32)
    hp = jnp.concatenate([zp2, h, zp2], axis=0)                    # (L+2, HID)
    acc2 = jnp.dot(hp[0:L].astype(jnp.bfloat16), w2_ref[0],
                   preferred_element_type=jnp.float32) + b2_ref[...]
    for t in range(1, 3):
        acc2 = acc2 + jnp.dot(hp[t:t + L].astype(jnp.bfloat16), w2_ref[t],
                              preferred_element_type=jnp.float32)

    o_ref[0] = acc2.astype(o_ref.dtype)


def simpleconv_pallas(x_bf, scale, shift, w1_taps, b1, w2_taps, b2):
    """x_bf: (B, L, H) bf16 channels-last.  Returns padded logits (B, L, NLP) f32."""
    B, L, H = x_bf.shape
    HID = w1_taps.shape[2]
    NLP = w2_taps.shape[2]            # already padded to a multiple of 128

    return pl.pallas_call(
        _simpleconv_kernel,
        out_shape=jax.ShapeDtypeStruct((B, L, NLP), jnp.float32),
        grid_spec=pltpu.PrefetchScalarGridSpec(
            num_scalar_prefetch=0,
            grid=(B,),
            in_specs=[
                pl.BlockSpec((1, L, H), lambda b: (b, 0, 0)),      # x (bf16)
                pl.BlockSpec((1, H), lambda b: (0, 0)),            # BN scale (f32)
                pl.BlockSpec((1, H), lambda b: (0, 0)),            # BN shift (f32)
                pl.BlockSpec((5, H, HID), lambda b: (0, 0, 0)),    # conv1 taps (bf16)
                pl.BlockSpec((1, HID), lambda b: (0, 0)),          # conv1 bias (f32)
                pl.BlockSpec((3, HID, NLP), lambda b: (0, 0, 0)),  # conv2 taps (bf16)
                pl.BlockSpec((1, NLP), lambda b: (0, 0)),          # conv2 bias (f32)
            ],
            out_specs=pl.BlockSpec((1, L, NLP), lambda b: (b, 0, 0)),
        ),
        compiler_params=pltpu.CompilerParams(
            dimension_semantics=("parallel",),
            vmem_limit_bytes=64 * 1024 * 1024),
    )(x_bf, scale, shift, w1_taps, b1, w2_taps, b2)


# -----------------------------------------------------------------------------
# Parameter construction (deterministic, synthetic)
# -----------------------------------------------------------------------------
def init_params(key, hidden_size, hid_dim, num_labels):
    ks = jax.random.split(key, 6)
    # BatchNorm1d(hidden_size) affine params
    bn_gamma = 1.0 + 0.01 * jax.random.normal(ks[0], (hidden_size,), jnp.float32)
    bn_beta = 0.01 * jax.random.normal(ks[1], (hidden_size,), jnp.float32)
    # weight_norm(Conv1d(hidden_size, hid_dim, 5), dim=None): v (out,in,k), g scalar
    w1_v = 0.05 * jax.random.normal(ks[2], (hid_dim, hidden_size, 5), jnp.float32)
    w1_g = jnp.linalg.norm(w1_v)            # PyTorch init: g = ||v||_F  =>  w == v
    b1 = 0.01 * jax.random.normal(ks[3], (hid_dim,), jnp.float32)
    # weight_norm(Conv1d(hid_dim, num_labels, 3), dim=None)
    w2_v = 0.05 * jax.random.normal(ks[4], (num_labels, hid_dim, 3), jnp.float32)
    w2_g = jnp.linalg.norm(w2_v)
    b2 = 0.01 * jax.random.normal(ks[5], (num_labels,), jnp.float32)
    return dict(bn_gamma=bn_gamma, bn_beta=bn_beta,
                w1_v=w1_v, w1_g=w1_g, b1=b1,
                w2_v=w2_v, w2_g=w2_g, b2=b2)


# -----------------------------------------------------------------------------
# Forward wrapper (glue in plain JAX, hot path in the Pallas kernel)
# -----------------------------------------------------------------------------
@functools.partial(jax.jit, static_argnames=("ignore_index", "with_targets"))
def seq2seq_head_forward(sequence_output, params, targets=None,
                         ignore_index=-100, with_targets=False):
    x = sequence_output.astype(jnp.float32)          # (B, L, H)

    # --- BatchNorm1d, module default = train mode: batch stats over (B, L) ---
    # Stats / affine fold kept in f32 (precision).
    mean = jnp.mean(x, axis=(0, 1))                                  # (H,)
    var = jnp.mean(jnp.square(x - mean), axis=(0, 1))                # biased var
    bn_scale = params["bn_gamma"] / jnp.sqrt(var + 1e-5)
    bn_shift = params["bn_beta"] - mean * bn_scale

    # --- weight_norm(dim=None):  w = g * v / ||v||_F  (f32) ---
    w1 = params["w1_g"] * params["w1_v"] / jnp.linalg.norm(params["w1_v"])
    w2 = params["w2_g"] * params["w2_v"] / jnp.linalg.norm(params["w2_v"])
    # re-pack (out, in, k) -> per-tap matrices (k, in, out)
    w1_taps = jnp.transpose(w1, (2, 1, 0))           # (5, H, HID)
    w2_taps = jnp.transpose(w2, (2, 1, 0))           # (3, HID, NL)

    # --- pad num_labels to a lane-dense multiple of 128 ---
    num_labels = w2_taps.shape[2]
    nlp = max(LANE, ((num_labels + LANE - 1) // LANE) * LANE)
    pad_n = nlp - num_labels
    w2_taps_p = jnp.pad(w2_taps, ((0, 0), (0, 0), (0, pad_n)))
    b2_p = jnp.pad(params["b2"], ((0, pad_n),))

    logits_p = simpleconv_pallas(
        x.astype(jnp.bfloat16),                      # bf16 activations to the MXU
        bn_scale.reshape(1, -1), bn_shift.reshape(1, -1),
        w1_taps.astype(jnp.bfloat16), params["b1"].reshape(1, -1),
        w2_taps_p.astype(jnp.bfloat16), b2_p.reshape(1, -1),
    )                                                # (B, L, NLP) f32
    logits = logits_p[..., :num_labels]              # (B, L, NL)

    if not with_targets:
        return (logits,)

    # --- CrossEntropyLoss(ignore_index) + Accuracy (glue, not the hot path) ---
    nl = logits.shape[-1]
    lf = logits.reshape(-1, nl).astype(jnp.float32)
    tf = targets.reshape(-1)
    valid = tf != ignore_index
    t_safe = jnp.where(valid, tf, 0)
    logz = jax.nn.logsumexp(lf, axis=-1)
    nll = logz - jnp.take_along_axis(lf, t_safe[:, None], axis=-1)[:, 0]
    n_valid = jnp.maximum(jnp.sum(valid), 1).astype(jnp.float32)   # guard /0
    loss = jnp.sum(jnp.where(valid, nll, 0.0)) / n_valid
    preds = jnp.argmax(lf, axis=-1)
    acc = jnp.sum((preds == tf) & valid).astype(jnp.float32) / n_valid
    metrics = {"accuracy": acc}
    return ((loss, metrics), logits)


# -----------------------------------------------------------------------------
if __name__ == "__main__":
    B, L, H = 2, 8, 32          # batch, sequence length, hidden_size
    HID = 1280                   # hard-coded in SimpleConv
    NL = 8                       # num_labels
    IGNORE = -100

    key = jax.random.PRNGKey(0)
    k_x, k_p, k_t = jax.random.split(key, 3)

    sequence_output = jax.random.normal(k_x, (B, L, H), jnp.float32)
    params = init_params(k_p, H, HID, NL)
    targets = jax.random.randint(k_t, (B, L), 0, NL)
    targets = targets.at[0, 0].set(IGNORE)   # exercise ignore_index path

    # logits only
    (logits,) = seq2seq_head_forward(sequence_output, params)
    logits = jax.block_until_ready(logits)
    assert logits.shape == (B, L, NL)

    # with targets -> ((loss, metrics), logits)
    (loss, metrics), logits2 = seq2seq_head_forward(
        sequence_output, params, targets,
        ignore_index=IGNORE, with_targets=True)
    jax.block_until_ready((loss, metrics["accuracy"], logits2))
    assert logits2.shape == (B, L, NL)
    assert bool(jnp.isfinite(loss))

    print("KERNEL_OK")
</pallas_src>

<mosaic_0001>
module attributes {stable_mosaic.version = 11 : i64} {
  func.func @_simpleconv_kernel(%arg0: i32, %arg1: memref<1x8x32xbf16, #tpu.memory_space<vmem>>, %arg2: memref<1x32xf32, #tpu.memory_space<vmem>>, %arg3: memref<1x32xf32, #tpu.memory_space<vmem>>, %arg4: memref<5x32x1280xbf16, #tpu.memory_space<vmem>>, %arg5: memref<1x1280xf32, #tpu.memory_space<vmem>>, %arg6: memref<3x1280x128xbf16, #tpu.memory_space<vmem>>, %arg7: memref<1x128xf32, #tpu.memory_space<vmem>>, %arg8: memref<1x8x128xf32, #tpu.memory_space<vmem>>) attributes {dimension_semantics = [#tpu.dimension_semantics<parallel>], iteration_bounds = array<i64: 2>, scalar_prefetch = 0 : i64, scratch_operands = 0 : i64, tpu.core_type = #tpu.core_type<tc>, window_params = [{transform_indices = @transform_0, window_bounds = array<i64: 1, 8, 32>}, {pipeline_mode = #tpu.pipeline_mode<synchronous>, transform_indices = @transform_1, window_bounds = array<i64: 1, 32>}, {pipeline_mode = #tpu.pipeline_mode<synchronous>, transform_indices = @transform_2, window_bounds = array<i64: 1, 32>}, {pipeline_mode = #tpu.pipeline_mode<synchronous>, transform_indices = @transform_3, window_bounds = array<i64: 5, 32, 1280>}, {pipeline_mode = #tpu.pipeline_mode<synchronous>, transform_indices = @transform_4, window_bounds = array<i64: 1, 1280>}, {pipeline_mode = #tpu.pipeline_mode<synchronous>, transform_indices = @transform_5, window_bounds = array<i64: 3, 1280, 128>}, {pipeline_mode = #tpu.pipeline_mode<synchronous>, transform_indices = @transform_6, window_bounds = array<i64: 1, 128>}, {transform_indices = @transform_7, window_bounds = array<i64: 1, 8, 128>}]} {
    %c0 = arith.constant 0 : index
    %c0_0 = arith.constant 0 : index
    %c0_1 = arith.constant 0 : index
    %0 = vector.load %arg1[%c0, %c0_0, %c0_1] : memref<1x8x32xbf16, #tpu.memory_space<vmem>>, vector<1x8x32xbf16>
    %1 = vector.shape_cast %0 : vector<1x8x32xbf16> to vector<8x32xbf16>
    %2 = arith.extf %1 : vector<8x32xbf16> to vector<8x32xf32>
    %c0_2 = arith.constant 0 : index
    %c0_3 = arith.constant 0 : index
    %3 = vector.load %arg2[%c0_2, %c0_3] : memref<1x32xf32, #tpu.memory_space<vmem>>, vector<1x32xf32>
    %4 = vector.broadcast %3 : vector<1x32xf32> to vector<8x32xf32>
    %5 = arith.mulf %2, %4 : vector<8x32xf32>
    %c0_4 = arith.constant 0 : index
    %c0_5 = arith.constant 0 : index
    %6 = vector.load %arg3[%c0_4, %c0_5] : memref<1x32xf32, #tpu.memory_space<vmem>>, vector<1x32xf32>
    %7 = vector.broadcast %6 : vector<1x32xf32> to vector<8x32xf32>
    %8 = arith.addf %5, %7 : vector<8x32xf32>
    %cst = arith.constant 0.000000e+00 : f32
    %9 = vector.broadcast %cst : f32 to vector<2x32xf32>
    %10 = tpu.concatenate %9, %8, %9 in 0 : vector<2x32xf32>, vector<8x32xf32>, vector<2x32xf32> -> vector<12x32xf32>
    %11 = vector.extract_strided_slice %10 {offsets = [0, 0], sizes = [8, 32], strides = [1, 1]} : vector<12x32xf32> to vector<8x32xf32>
    %12 = arith.truncf %11 : vector<8x32xf32> to vector<8x32xbf16>
    %c0_6 = arith.constant 0 : index
    %c0_7 = arith.constant 0 : index
    %c0_8 = arith.constant 0 : index
    %13 = vector.load %arg4[%c0_6, %c0_7, %c0_8] : memref<5x32x1280xbf16, #tpu.memory_space<vmem>>, vector<1x32x1280xbf16>
    %14 = vector.shape_cast %13 : vector<1x32x1280xbf16> to vector<32x1280xbf16>
    %cst_9 = arith.constant dense<0.000000e+00> : vector<8x1280xf32>
    %15 = tpu.matmul %12, %14, %cst_9 {dimension_numbers = #tpu.dot_dimension_numbers<[1], [0], [0], [1], [0, 0, 1, 1], [], []>} : vector<8x32xbf16>, vector<32x1280xbf16>, vector<8x1280xf32> -> vector<8x1280xf32>
    %c0_10 = arith.constant 0 : index
    %c0_11 = arith.constant 0 : index
    %16 = vector.load %arg5[%c0_10, %c0_11] : memref<1x1280xf32, #tpu.memory_space<vmem>>, vector<1x1280xf32>
    %17 = vector.broadcast %16 : vector<1x1280xf32> to vector<8x1280xf32>
    %18 = arith.addf %15, %17 : vector<8x1280xf32>
    %19 = vector.extract_strided_slice %10 {offsets = [1, 0], sizes = [8, 32], strides = [1, 1]} : vector<12x32xf32> to vector<8x32xf32>
    %20 = arith.truncf %19 : vector<8x32xf32> to vector<8x32xbf16>
    %c1 = arith.constant 1 : index
    %c0_12 = arith.constant 0 : index
    %c0_13 = arith.constant 0 : index
    %21 = vector.load %arg4[%c1, %c0_12, %c0_13] : memref<5x32x1280xbf16, #tpu.memory_space<vmem>>, vector<1x32x1280xbf16>
    %22 = vector.shape_cast %21 : vector<1x32x1280xbf16> to vector<32x1280xbf16>
    %cst_14 = arith.constant dense<0.000000e+00> : vector<8x1280xf32>
    %23 = tpu.matmul %20, %22, %cst_14 {dimension_numbers = #tpu.dot_dimension_numbers<[1], [0], [0], [1], [0, 0, 1, 1], [], []>} : vector<8x32xbf16>, vector<32x1280xbf16>, vector<8x1280xf32> -> vector<8x1280xf32>
    %24 = arith.addf %18, %23 : vector<8x1280xf32>
    %25 = vector.extract_strided_slice %10 {offsets = [2, 0], sizes = [8, 32], strides = [1, 1]} : vector<12x32xf32> to vector<8x32xf32>
    %26 = arith.truncf %25 : vector<8x32xf32> to vector<8x32xbf16>
    %c2 = arith.constant 2 : index
    %c0_15 = arith.constant 0 : index
    %c0_16 = arith.constant 0 : index
    %27 = vector.load %arg4[%c2, %c0_15, %c0_16] : memref<5x32x1280xbf16, #tpu.memory_space<vmem>>, vector<1x32x1280xbf16>
    %28 = vector.shape_cast %27 : vector<1x32x1280xbf16> to vector<32x1280xbf16>
    %cst_17 = arith.constant dense<0.000000e+00> : vector<8x1280xf32>
    %29 = tpu.matmul %26, %28, %cst_17 {dimension_numbers = #tpu.dot_dimension_numbers<[1], [0], [0], [1], [0, 0, 1, 1], [], []>} : vector<8x32xbf16>, vector<32x1280xbf16>, vector<8x1280xf32> -> vector<8x1280xf32>
    %30 = arith.addf %24, %29 : vector<8x1280xf32>
    %31 = vector.extract_strided_slice %10 {offsets = [3, 0], sizes = [8, 32], strides = [1, 1]} : vector<12x32xf32> to vector<8x32xf32>
    %32 = arith.truncf %31 : vector<8x32xf32> to vector<8x32xbf16>
    %c3 = arith.constant 3 : index
    %c0_18 = arith.constant 0 : index
    %c0_19 = arith.constant 0 : index
    %33 = vector.load %arg4[%c3, %c0_18, %c0_19] : memref<5x32x1280xbf16, #tpu.memory_space<vmem>>, vector<1x32x1280xbf16>
    %34 = vector.shape_cast %33 : vector<1x32x1280xbf16> to vector<32x1280xbf16>
    %cst_20 = arith.constant dense<0.000000e+00> : vector<8x1280xf32>
    %35 = tpu.matmul %32, %34, %cst_20 {dimension_numbers = #tpu.dot_dimension_numbers<[1], [0], [0], [1], [0, 0, 1, 1], [], []>} : vector<8x32xbf16>, vector<32x1280xbf16>, vector<8x1280xf32> -> vector<8x1280xf32>
    %36 = arith.addf %30, %35 : vector<8x1280xf32>
    %37 = vector.extract_strided_slice %10 {offsets = [4, 0], sizes = [8, 32], strides = [1, 1]} : vector<12x32xf32> to vector<8x32xf32>
    %38 = arith.truncf %37 : vector<8x32xf32> to vector<8x32xbf16>
    %c4 = arith.constant 4 : index
    %c0_21 = arith.constant 0 : index
    %c0_22 = arith.constant 0 : index
    %39 = vector.load %arg4[%c4, %c0_21, %c0_22] : memref<5x32x1280xbf16, #tpu.memory_space<vmem>>, vector<1x32x1280xbf16>
    %40 = vector.shape_cast %39 : vector<1x32x1280xbf16> to vector<32x1280xbf16>
    %cst_23 = arith.constant dense<0.000000e+00> : vector<8x1280xf32>
    %41 = tpu.matmul %38, %40, %cst_23 {dimension_numbers = #tpu.dot_dimension_numbers<[1], [0], [0], [1], [0, 0, 1, 1], [], []>} : vector<8x32xbf16>, vector<32x1280xbf16>, vector<8x1280xf32> -> vector<8x1280xf32>
    %42 = arith.addf %36, %41 : vector<8x1280xf32>
    %cst_24 = arith.constant 0.000000e+00 : f32
    %43 = vector.broadcast %cst_24 : f32 to vector<8x1280xf32>
    %44 = arith.maximumf %42, %43 : vector<8x1280xf32>
    %cst_25 = arith.constant 0.000000e+00 : f32
    %45 = vector.broadcast %cst_25 : f32 to vector<1x1280xf32>
    %46 = tpu.concatenate %45, %44, %45 in 0 : vector<1x1280xf32>, vector<8x1280xf32>, vector<1x1280xf32> -> vector<10x1280xf32>
    %47 = vector.extract_strided_slice %46 {offsets = [0, 0], sizes = [8, 1280], strides = [1, 1]} : vector<10x1280xf32> to vector<8x1280xf32>
    %48 = arith.truncf %47 : vector<8x1280xf32> to vector<8x1280xbf16>
    %c0_26 = arith.constant 0 : index
    %c0_27 = arith.constant 0 : index
    %c0_28 = arith.constant 0 : index
    %49 = vector.load %arg6[%c0_26, %c0_27, %c0_28] : memref<3x1280x128xbf16, #tpu.memory_space<vmem>>, vector<1x1280x128xbf16>
    %50 = vector.shape_cast %49 : vector<1x1280x128xbf16> to vector<1280x128xbf16>
    %cst_29 = arith.constant dense<0.000000e+00> : vector<8x128xf32>
    %51 = tpu.matmul %48, %50, %cst_29 {dimension_numbers = #tpu.dot_dimension_numbers<[1], [0], [0], [1], [0, 0, 1, 1], [], []>} : vector<8x1280xbf16>, vector<1280x128xbf16>, vector<8x128xf32> -> vector<8x128xf32>
    %c0_30 = arith.constant 0 : index
    %c0_31 = arith.constant 0 : index
    %52 = vector.load %arg7[%c0_30, %c0_31] : memref<1x128xf32, #tpu.memory_space<vmem>>, vector<1x128xf32>
    %53 = vector.broadcast %52 : vector<1x128xf32> to vector<8x128xf32>
    %54 = arith.addf %51, %53 : vector<8x128xf32>
    %55 = vector.extract_strided_slice %46 {offsets = [1, 0], sizes = [8, 1280], strides = [1, 1]} : vector<10x1280xf32> to vector<8x1280xf32>
    %56 = arith.truncf %55 : vector<8x1280xf32> to vector<8x1280xbf16>
    %c1_32 = arith.constant 1 : index
    %c0_33 = arith.constant 0 : index
    %c0_34 = arith.constant 0 : index
    %57 = vector.load %arg6[%c1_32, %c0_33, %c0_34] : memref<3x1280x128xbf16, #tpu.memory_space<vmem>>, vector<1x1280x128xbf16>
    %58 = vector.shape_cast %57 : vector<1x1280x128xbf16> to vector<1280x128xbf16>
    %cst_35 = arith.constant dense<0.000000e+00> : vector<8x128xf32>
    %59 = tpu.matmul %56, %58, %cst_35 {dimension_numbers = #tpu.dot_dimension_numbers<[1], [0], [0], [1], [0, 0, 1, 1], [], []>} : vector<8x1280xbf16>, vector<1280x128xbf16>, vector<8x128xf32> -> vector<8x128xf32>
    %60 = arith.addf %54, %59 : vector<8x128xf32>
    %61 = vector.extract_strided_slice %46 {offsets = [2, 0], sizes = [8, 1280], strides = [1, 1]} : vector<10x1280xf32> to vector<8x1280xf32>
    %62 = arith.truncf %61 : vector<8x1280xf32> to vector<8x1280xbf16>
    %c2_36 = arith.constant 2 : index
    %c0_37 = arith.constant 0 : index
    %c0_38 = arith.constant 0 : index
    %63 = vector.load %arg6[%c2_36, %c0_37, %c0_38] : memref<3x1280x128xbf16, #tpu.memory_space<vmem>>, vector<1x1280x128xbf16>
    %64 = vector.shape_cast %63 : vector<1x1280x128xbf16> to vector<1280x128xbf16>
    %cst_39 = arith.constant dense<0.000000e+00> : vector<8x128xf32>
    %65 = tpu.matmul %62, %64, %cst_39 {dimension_numbers = #tpu.dot_dimension_numbers<[1], [0], [0], [1], [0, 0, 1, 1], [], []>} : vector<8x1280xbf16>, vector<1280x128xbf16>, vector<8x128xf32> -> vector<8x128xf32>
    %66 = arith.addf %60, %65 : vector<8x128xf32>
    %c0_40 = arith.constant 0 : index
    %c0_41 = arith.constant 0 : index
    %c0_42 = arith.constant 0 : index
    %67 = vector.load %arg8[%c0_40, %c0_41, %c0_42] : memref<1x8x128xf32, #tpu.memory_space<vmem>>, vector<1x8x128xf32>
    %68 = vector.shape_cast %67 : vector<1x8x128xf32> to vector<8x128xf32>
    %69 = vector.shape_cast %66 : vector<8x128xf32> to vector<1x8x128xf32>
    tpu.vector_store %arg8[%c0_40, %c0_41, %c0_42], %69 {strides = array<i32>} : memref<1x8x128xf32, #tpu.memory_space<vmem>>, vector<1x8x128xf32>,
    return
  }
  func.func @transform_0(%arg0: i32) -> (i32, i32, i32) {
    %c0_i32 = arith.constant 0 : i32
    %c0_i32_0 = arith.constant 0 : i32
    %c0_i32_1 = arith.constant 0 : i32
    return %arg0, %c0_i32, %c0_i32_0 : i32, i32, i32
  }
  func.func @transform_1(%arg0: i32) -> (i32, i32) {
    %c0_i32 = arith.constant 0 : i32
    %c0_i32_0 = arith.constant 0 : i32
    %c0_i32_1 = arith.constant 0 : i32
    return %c0_i32, %c0_i32_0 : i32, i32
  }
  func.func @transform_2(%arg0: i32) -> (i32, i32) {
    %c0_i32 = arith.constant 0 : i32
    %c0_i32_0 = arith.constant 0 : i32
    %c0_i32_1 = arith.constant 0 : i32
    return %c0_i32, %c0_i32_0 : i32, i32
  }
  func.func @transform_3(%arg0: i32) -> (i32, i32, i32) {
    %c0_i32 = arith.constant 0 : i32
    %c0_i32_0 = arith.constant 0 : i32
    %c0_i32_1 = arith.constant 0 : i32
    %c0_i32_2 = arith.constant 0 : i32
    return %c0_i32, %c0_i32_0, %c0_i32_1 : i32, i32, i32
  }
  func.func @transform_4(%arg0: i32) -> (i32, i32) {
    %c0_i32 = arith.constant 0 : i32
    %c0_i32_0 = arith.constant 0 : i32
    %c0_i32_1 = arith.constant 0 : i32
    return %c0_i32, %c0_i32_0 : i32, i32
  }
  func.func @transform_5(%arg0: i32) -> (i32, i32, i32) {
    %c0_i32 = arith.constant 0 : i32
    %c0_i32_0 = arith.constant 0 : i32
    %c0_i32_1 = arith.constant 0 : i32
    %c0_i32_2 = arith.constant 0 : i32
    return %c0_i32, %c0_i32_0, %c0_i32_1 : i32, i32, i32
  }
  func.func @transform_6(%arg0: i32) -> (i32, i32) {
    %c0_i32 = arith.constant 0 : i32
    %c0_i32_0 = arith.constant 0 : i32
    %c0_i32_1 = arith.constant 0 : i32
    return %c0_i32, %c0_i32_0 : i32, i32
  }
  func.func @transform_7(%arg0: i32) -> (i32, i32, i32) {
    %c0_i32 = arith.constant 0 : i32
    %c0_i32_0 = arith.constant 0 : i32
    %c0_i32_1 = arith.constant 0 : i32
    return %arg0, %c0_i32, %c0_i32_0 : i32, i32, i32
  }
}

</mosaic_0001>

<bundles_post_ra>
// kernel: seq2seq_head_forward.1
= control target key start
LH: loop header
LB: loop body
LE: loop exit
PB: predicated region body
PF: predicated region fallthrough
CT: control target
= control target key end

     0   :  { %s7320_s0 = inlined_call_operand.hbm [shape: bf16[2,8,32], index: 0, kind: input, shape index: {}]   ;;  %s7321_s1 = inlined_call_operand.hbm [shape: f32[1,32], index: 1, kind: input, shape index: {}]   ;;  %s7322_s2 = inlined_call_operand.hbm [shape: f32[1,32], index: 2, kind: input, shape index: {}]   ;;  %s7323_s3 = inlined_call_operand.hbm [shape: bf16[5,32,1280], index: 3, kind: input, shape index: {}]   ;;  %s7324_s4 = inlined_call_operand.hbm [shape: f32[1,1280], index: 4, kind: input, shape index: {}]   ;;  %s7325_s5 = inlined_call_operand.hbm [shape: bf16[3,1280,128], index: 5, kind: input, shape index: {}]   ;;  %s7326_s6 = inlined_call_operand.hbm [shape: f32[1,128], index: 6, kind: input, shape index: {}]   ;;  %s7327_s7 = inlined_call_operand.hbm [shape: f32[2,8,128], index: 7, kind: output, shape index: {}]  }
   0x1   :  { %7331 = sst [smem:[#allocation20_spill]] %s7321_s1 }
   0x2   :  { %12 = vsyncpa [#allocation3], 0 }
   0x3   :  { %14 = vsyncpa [#allocation3 + $0x1], 0 }
   0x4   :  { %15 = vsyncpa [#allocation6], 0 }
   0x5   :  { %16 = vsyncpa [#allocation9], 0 }
   0x6   :  { %17 = vsyncpa [#allocation12], 0 }
   0x7   :  { %18 = vsyncpa [#allocation4], 0 }
   0x8   :  { %20 = vsyncpa [#allocation4 + $0x1], 0  ;;  %s6711_s24 = smov 0   ;;  %s6713_s25 = smov 0  }
   0x9   :  { %s6715_s26 = smov 0   ;;  %s6717_s27 = smov 0  }
   0xa LB: > { %s6658_s28 = smov [#allocation5]   ;;  %s6732_s30 = sadd.s32 4294967295, %s6656_s27   ;;  %s6656_s27 = sphi %s6717_s27, %s7357_s27   ;;  %s6652_s26 = sphi %s6715_s26, %s7356_s26   ;;  %s6648_s25 = sphi %s6713_s25, %s7355_s25   ;;  %s6644_s24 = sphi %s6711_s24, %s7354_s24  }
   0xb   : > { %s222_s29 = sshll.u32 %s6658_s28, 4  ;;  %p5017_p0 = scmp.ge.s32.totalorder %s6656_s27, 1  ;;  %s6737_s29 = int_to_ptr.vmem [resolvable:$true] %s222_s29 }
   0xc   : > { %p7328_p1 = scmp.eq.s32.totalorder %s6732_s30, 0  ;;  %p209_p2 = scmp.lt.s32.totalorder %s6656_s27, 3 }
   0xd   : > { %s6659_s9 = smov [#allocation8]   ;;  %s6660_s12 = smov [#allocation11]  }
   0xe   : > { %p6739_p3 = pnand %p5017_p0, %p209_p2  ;;  %s243_s10 = sshll.u32 %s6659_s9, 4  ;;  %s6746_s10 = int_to_ptr.vmem [resolvable:$true] %s243_s10 }
   0xf   : > { %s267_s13 = sshll.u32 %s6660_s12, 4  ;;  %s7334_s1 = sld [smem:[#allocation20_spill]]  ;;  %s6754_s13 = int_to_ptr.vmem [resolvable:$true] %s267_s13 }
  0x10   : > { %s7332_s8 = scalar_select %p6739_p3, 1, 0 }
  0x11   : > { %p5906_p5 = pneg %p6739_p3 }
  0x13   : > { %p6750_p6 = pnand %p5906_p5, %p7328_p1 }
  0x15   : > { %s6380_s16 = scalar_lea.hbm %s7334_s1, 16  ;;  %p6764_p8 = pneg %p6750_p6 }
  0x16   : > { %p6381_p7 = scmp.ne.s32.totalorder %s7334_s1, %s6380_s16  ;;  %p6387_p11 = scmp.lt.u32.totalorder %s6380_s16, %s7334_s1 }
  0x18   : > { %p6383_p9 = pnand %p6764_p8, %p6381_p7 }
  0x1a   : > { %p6384_p10 = pneg %p6383_p9 }
  0x1c   : > { %p6389_p12 = pnand %p6387_p11, %p6384_p10 }
  0x1e   : > { %6392 = shalt.err (!%p6389_p12)
}
  0x1f   : > { %s6393_s22 = scalar_lea.vmem %s6737_s29, 16  ;;  %s6400_s23 = scalar_lea.vmem %s6737_s29, 32 }
  0x20   : > { %p6394_p13 = scmp.ne.s32.totalorder %s6737_s29, %s6393_s22  ;;  %p6401_p5 = scmp.lt.s32.totalorder %s6737_s29, %s6737_s29 }
  0x21   : > { %p6402_p7 = scmp.lt.s32.totalorder %s6400_s23, %s6393_s22 }
  0x22   : > { %p6396_p0 = pnand %p6394_p13, %p6764_p8 }
  0x23   : > { %p6403_p9 = por %p6402_p7, %p6401_p5 }
  0x24   : > { %p6397_p2 = pneg %p6396_p0 }
  0x26   : > { %p6404_p4 = pnand %p6403_p9, %p6397_p2 }
  0x28   : > { %6407 = shalt.err (!%p6404_p4)
}
  0x29   : > { %5909 = dma.hbm_to_vmem [thread:$0]  (!%p6750_p6), %s7334_s1, 16, %s6737_s29, [#allocation6]  }
  0x2a   : > { %s6408_s15 = scalar_lea.hbm %s7323_s3, 12800 }
  0x2b   : > { %p6409_p10 = scmp.ne.s32.totalorder %s7323_s3, %s6408_s15  ;;  %p6415_p4 = scmp.lt.u32.totalorder %s6408_s15, %s7323_s3 }
  0x2d   : > { %p6411_p11 = pnand %p6409_p10, %p6764_p8 }
  0x2f   : > { %p6412_p12 = pneg %p6411_p11 }
  0x31   : > { %p6417_p13 = pnand %p6415_p4, %p6412_p12 }
  0x33   : > { %6420 = shalt.err (!%p6417_p13)
}
  0x34   : > { %s6421_s29 = scalar_lea.vmem %s6746_s10, 12800  ;;  %p6429_p7 = scmp.lt.s32.totalorder %s6746_s10, %s6746_s10 }
  0x35   : > { %p6422_p0 = scmp.ne.s32.totalorder %s6746_s10, %s6421_s29  ;;  %p6430_p9 = scmp.lt.s32.totalorder %s6421_s29, %s6421_s29 }
  0x37   : > { %p6424_p2 = pnand %p6422_p0, %p6764_p8  ;;  %p6431_p10 = por %p6430_p9, %p6429_p7 }
  0x39   : > { %p6425_p5 = pneg %p6424_p2 }
  0x3b   : > { %p6432_p11 = pnand %p6431_p10, %p6425_p5 }
  0x3d   : > { %6435 = shalt.err (!%p6432_p11)
}
  0x3e   : > { %s6661_s21 = smov 640   ;;  %s6662_s22 = smov 40  }
  0x3f   : > { %5915 = dma.hbm_to_vmem [thread:$0]  (!%p6750_p6), %s7323_s3, 12800, %s6746_s10, [#allocation9], %s6661_s21, %s6661_s21, %s6662_s22  }
  0x40   : > { %s6436_s14 = scalar_lea.hbm %s7325_s5, 30720 }
  0x41   : > { %p6437_p12 = scmp.ne.s32.totalorder %s7325_s5, %s6436_s14  ;;  %p6443_p0 = scmp.lt.u32.totalorder %s6436_s14, %s7325_s5 }
  0x43   : > { %p6439_p4 = pnand %p6437_p12, %p6764_p8 }
  0x45   : > { %p6440_p13 = pneg %p6439_p4 }
  0x47   : > { %p6445_p2 = pnand %p6443_p0, %p6440_p13 }
  0x49   : > { %6448 = shalt.err (!%p6445_p2)
}
  0x4a   : > { %s6449_s10 = scalar_lea.vmem %s6754_s13, 30720  ;;  %p6457_p10 = scmp.lt.s32.totalorder %s6754_s13, %s6754_s13 }
  0x4b   : > { %p6450_p5 = scmp.ne.s32.totalorder %s6754_s13, %s6449_s10  ;;  %p6458_p11 = scmp.lt.s32.totalorder %s6449_s10, %s6449_s10 }
  0x4d   : > { %p6452_p7 = pnand %p6450_p5, %p6764_p8  ;;  %p6459_p12 = por %p6458_p11, %p6457_p10 }
  0x4f   : > { %p6453_p9 = pneg %p6452_p7 }
  0x51   : > { %p6460_p4 = pnand %p6459_p12, %p6453_p9 }
  0x53   : > { %6463 = shalt.err (!%p6460_p4)
}
  0x54   : > { %s6663_s20 = smov 64   ;;  %s6664_s29 = smov 4  }
  0x55   : > { %5921 = dma.hbm_to_vmem [thread:$0]  (!%p6750_p6), %s7325_s5, 30720, %s6754_s13, [#allocation12], %s6663_s20, %s6663_s20, %s6664_s29  }
  0x56   : > { %s6665_s23 = smov [#allocation7]   ;;  %s6666_s9 = smov [#allocation10]  }
  0x57   : > { %s233_s28 = sshll.u32 %s6665_s23, 4  ;;  %s257_s12 = sshll.u32 %s6666_s9, 4  ;;  %s234_s28 = int_to_ptr.vmem [resolvable:$true] %s233_s28  ;;  %s258_s12 = int_to_ptr.vmem [resolvable:$true] %s257_s12 }
  0x58   : > { %s6464_s16 = scalar_lea.hbm %s7322_s2, 16 }
  0x59   : > { %p6465_p13 = scmp.ne.s32.totalorder %s7322_s2, %s6464_s16  ;;  %p6471_p5 = scmp.lt.u32.totalorder %s6464_s16, %s7322_s2 }
  0x5b   : > { %p6467_p0 = pnand %p6465_p13, %p6764_p8 }
  0x5d   : > { %p6468_p2 = pneg %p6467_p0 }
  0x5f   : > { %p6473_p7 = pnand %p6471_p5, %p6468_p2 }
  0x61   : > { %6476 = shalt.err (!%p6473_p7)
}
  0x62   : > { %s6477_s13 = scalar_lea.vmem %s234_s28, 16  ;;  %s6484_s20 = scalar_lea.vmem %s234_s28, 32 }
  0x63   : > { %p6478_p9 = scmp.ne.s32.totalorder %s234_s28, %s6477_s13  ;;  %p6485_p12 = scmp.lt.s32.totalorder %s234_s28, %s234_s28 }
  0x64   : > { %p6486_p4 = scmp.lt.s32.totalorder %s6484_s20, %s6477_s13 }
  0x65   : > { %p6480_p10 = pnand %p6478_p9, %p6764_p8 }
  0x66   : > { %p6487_p1 = por %p6486_p4, %p6485_p12 }
  0x67   : > { %p6481_p11 = pneg %p6480_p10 }
  0x69   : > { %p6488_p3 = pnand %p6487_p1, %p6481_p11 }
  0x6b   : > { %6491 = shalt.err (!%p6488_p3)
}
  0x6c   : > { %5912 = dma.hbm_to_vmem [thread:$0]  (!%p6750_p6), %s7322_s2, 16, %s234_s28, [#allocation6]  }
  0x6d   : > { %s6492_s23 = scalar_lea.hbm %s7324_s4, 160 }
  0x6e   : > { %p6493_p13 = scmp.ne.s32.totalorder %s7324_s4, %s6492_s23  ;;  %p6499_p3 = scmp.lt.u32.totalorder %s6492_s23, %s7324_s4 }
  0x70   : > { %p6495_p0 = pnand %p6493_p13, %p6764_p8 }
  0x72   : > { %p6496_p1 = pneg %p6495_p0 }
  0x74   : > { %p6501_p2 = pnand %p6499_p3, %p6496_p1 }
  0x76   : > { %6504 = shalt.err (!%p6501_p2)
}
  0x77   : > { %s6505_s17 = scalar_lea.vmem %s258_s12, 160  ;;  %p6513_p10 = scmp.lt.s32.totalorder %s258_s12, %s258_s12 }
  0x78   : > { %p6506_p5 = scmp.ne.s32.totalorder %s258_s12, %s6505_s17  ;;  %p6514_p11 = scmp.lt.s32.totalorder %s6505_s17, %s6505_s17 }
  0x7a   : > { %p6508_p7 = pnand %p6506_p5, %p6764_p8  ;;  %p6515_p12 = por %p6514_p11, %p6513_p10 }
  0x7c   : > { %p6509_p9 = pneg %p6508_p7 }
  0x7e   : > { %p6516_p4 = pnand %p6515_p12, %p6509_p9 }
  0x80   : > { %6519 = shalt.err (!%p6516_p4)
}
  0x81   : > { %5918 = dma.hbm_to_vmem [thread:$0]  (!%p6750_p6), %s7324_s4, 160, %s258_s12, [#allocation9]  }
  0x82   : > { %s6667_s10 = smov [#allocation13]   ;;  %s6520_s21 = scalar_lea.hbm %s7326_s6, 16 }
  0x83   : > { %s281_s13 = sshll.u32 %s6667_s10, 4  ;;  %p6521_p13 = scmp.ne.s32.totalorder %s7326_s6, %s6520_s21  ;;  %s282_s13 = int_to_ptr.vmem [resolvable:$true] %s281_s13 }
  0x84   : > { %p6527_p3 = scmp.lt.u32.totalorder %s6520_s21, %s7326_s6 }
  0x85   : > { %p6523_p0 = pnand %p6521_p13, %p6764_p8 }
  0x87   : > { %p6524_p1 = pneg %p6523_p0 }
  0x89   : > { %p6529_p2 = pnand %p6527_p3, %p6524_p1 }
  0x8b   : > { %6532 = shalt.err (!%p6529_p2)
}
  0x8c   : > { %s6533_s12 = scalar_lea.vmem %s282_s13, 16  ;;  %s6540_s14 = scalar_lea.vmem %s282_s13, 32 }
  0x8d   : > { %p6534_p5 = scmp.ne.s32.totalorder %s282_s13, %s6533_s12  ;;  %p6541_p10 = scmp.lt.s32.totalorder %s282_s13, %s282_s13 }
  0x8e   : > { %p6542_p11 = scmp.lt.s32.totalorder %s6540_s14, %s6533_s12 }
  0x8f   : > { %p6536_p7 = pnand %p6534_p5, %p6764_p8 }
  0x90   : > { %p6543_p12 = por %p6542_p11, %p6541_p10 }
  0x91   : > { %p6537_p9 = pneg %p6536_p7 }
  0x93   : > { %p6544_p4 = pnand %p6543_p12, %p6537_p9 }
  0x95   : > { %6547 = shalt.err (!%p6544_p4)
}
  0x96   : > { %5924 = dma.hbm_to_vmem [thread:$0]  (!%p6750_p6), %s7326_s6, 16, %s282_s13, [#allocation12]  }
  0x97   : > { %s5016_s19 = sadd.s32 4294967294, %s6656_s27   ;;  %s6888_s11 = sadd.s32 1, %s6656_s27  }
  0x98   : > { %s30_s17 = ssub.s32 %s6656_s27, %s6888_s11  ;;  %s33_s28 = sadd.s32 1, %s6652_s26 }
  0x99   : > { %p31_p8 = scmp.eq.s32.totalorder %s30_s17, 0  ;;  %p40_p13 = scmp.ne.s32.totalorder %s6652_s26, %s6648_s25 }
  0x9a   : > { %p41_p0 = scmp.eq.s32.totalorder %s6656_s27, 0  ;;  %p46_p1 = scmp.ne.s32.totalorder %s6648_s25, %s6644_s24 }
  0x9b   : > { %s6899_s18 = scalar_select %p31_p8, %s6652_s26, %s33_s28  }
  0x9c   : > { %p6901_p3 = por %p41_p0, %p40_p13  ;;  %p7337_p2 = scmp.eq.s32.totalorder %s6732_s30, 0 }
  0x9d   : > { %p196_p5 = scmp.eq.s32.totalorder %s6732_s30, 1  ;;  %p202_p7 = scmp.eq.s32.totalorder %s5016_s19, 1 }
  0x9e   : > { %p6907_p6 = por %p7337_p2, %p46_p1  ;;  %p5939_p9 = scmp.lt.s32.totalorder %s6656_s27, 2 }
  0x9f   : > { %s292_s20 = sand.u32 1, %s6652_s26   ;;  %p6914_p10 = por %p196_p5, %p40_p13 }
  0xa0   : > { %p6918_p11 = por %p202_p7, %p46_p1  ;;  %s5025_s1 = sshll.u32 %s292_s20, 2 }
  0xa1   : > { %s7339_s29 = scalar_select %p6914_p10, 1, 0 }
  0xa2   : > { %s7340_s21 = scalar_select %p6918_p11, 1, 0 }
  0xa3   : > { %s5026_s22 = sshll.u32 %s6656_s27, 6  ;;  %s296_s14 = scalar_lea.vmem [#allocation2], %s5025_s1 }
  0xa4   : > { %s6926_s12 = scalar_lea.hbm %s7320_s0, %s5026_s22  ;;  %s303_s15 = sshll.u32 %s296_s14, 4  ;;  %s6928_s15 = int_to_ptr.vmem [resolvable:$true] %s303_s15 }
  0xa5   : > { %p6932_p12 = pnand %p5939_p9, %p6901_p3  ;;  %s293_s19 = scalar_lea.sflag [#allocation3], %s292_s20 }
  0xa6   : > { %s6548_s17 = scalar_lea.hbm %s6926_s12, 64  ;;  %s6553_s22 = scalar_lea.hbm %s7320_s0, 128 }
  0xa7   : > { %p6549_p4 = scmp.ne.s32.totalorder %s6926_s12, %s6548_s17  ;;  %p6550_p8 = pneg %p6932_p12 }
  0xa8   : > { %p6554_p1 = scmp.lt.u32.totalorder %s6926_s12, %s7320_s0  ;;  %p6555_p3 = scmp.lt.u32.totalorder %s6553_s22, %s6548_s17 }
  0xa9   : > { %p6551_p13 = pnand %p6550_p8, %p6549_p4  ;;  %p6557_p5 = scmp.lt.u32.totalorder %s6548_s17, %s6926_s12 }
  0xaa   : > { %p6556_p2 = por %p6555_p3, %p6554_p1 }
  0xab   : > { %p6552_p0 = pneg %p6551_p13 }
  0xac   : > { %p6558_p7 = por %p6557_p5, %p6556_p2 }
  0xae   : > { %p6559_p9 = pnand %p6558_p7, %p6552_p0 }
  0xb0   : > { %6562 = shalt.err (!%p6559_p9)
}
  0xb1   : > { %s6563_s20 = scalar_lea.vmem %s6928_s15, 64  ;;  %s6668_s9 = smov [#allocation2]  }
  0xb2   : > { %p6564_p4 = scmp.ne.s32.totalorder %s6928_s15, %s6563_s20  ;;  %s6568_s14 = sshll.u32 %s6668_s9, 4  ;;  %s6569_s14 = int_to_ptr.vmem [resolvable:$false] %s6568_s14 }
  0xb3   : > { %s6570_s28 = scalar_lea.vmem %s6569_s14, 128  ;;  %p6571_p10 = scmp.lt.s32.totalorder %s6928_s15, %s6569_s14 }
  0xb4   : > { %p6566_p13 = pnand %p6564_p4, %p6550_p8  ;;  %p6572_p1 = scmp.lt.s32.totalorder %s6570_s28, %s6563_s20 }
  0xb6   : > { %p6567_p11 = pneg %p6566_p13  ;;  %p6573_p3 = por %p6572_p1, %p6571_p10 }
  0xb8   : > { %p6574_p2 = pnand %p6573_p3, %p6567_p11 }
  0xba   : > { %6577 = shalt.err (!%p6574_p2)
}
  0xbb   : > { %5928 = dma.hbm_to_vmem [thread:$0]  (!%p6932_p12), %s6926_s12, 64, %s6928_s15, %s293_s19  }
  0xbc   : > { %p7342_p0 = scmp.ne.s32.totalorder %s7332_s8, 0 }
  0xbd   : > { %s6964_s17 = sand.u32 (!%p7342_p0), 1, %s6648_s25  }
  0xbe   : > { %312 = sbr.rel (%p7342_p0) target bundleno = 1002 (0x3ea), region = 48  ;;  %s5028_s1 = sshll.u32 (!%p7342_p0), %s6964_s17, 2 }
  0xbf   : > { %s315_s22 = scalar_lea.sflag (!%p7342_p0), [#allocation3], %s6964_s17  ;;  %s318_s10 = scalar_lea.vmem (!%p7342_p0), [#allocation2], %s5028_s1 }
  0xc5   : > { %6623 = dma.done.wait (%p6907_p6), %s315_s22, 64  }
  0xc6   : > { %6625 = vsyncadd (%p6907_p6), %s315_s22, 4294967232  ;;  %p7343_p10 = scmp.eq.s32.totalorder %s6732_s30, 0 }
  0xc8   : > { %6627 = dma.done.wait (%p7343_p10), [#allocation6], 32   ;;  %p7344_p11 = pmov %p7343_p10 }
  0xc9   : > { %p7345_p12 = pmov %p7343_p10 }
  0xca   : > { %6629 = vsyncadd (%p7344_p11), [#allocation6], 4294967264 }
  0xcb   : > { %6631 = dma.done.wait (%p7345_p12), [#allocation9], 12960   ;;  %p7346_p8 = pmov %p7343_p10 }
  0xcd   : > { %6633 = vsyncadd (%p7346_p8), [#allocation9], 4294954336  ;;  %p7347_p5 = pmov %p7346_p8 }
  0xcf   : > { %6635 = dma.done.wait (%p7347_p5), [#allocation12], 30736   ;;  %p7348_p7 = pmov %p7347_p5 }
  0xd0   : > { %v6669_v0 = vmov 0   ;;  %v5990_v1 = vld [vmem:[#allocation8 + $0x4] ss:$40 sps:$4 sm:$0xff]   ;;  %v5992_v2 = vld [vmem:[#allocation8] ss:$40 sps:$4 sm:$0xff]   ;;  %vm395_vm0 = vcmask 1041408  }
  0xd1   : > { %6637 = vsyncadd (%p7348_p7), [#allocation12], 4294936560  ;;  %609 = vmatprep.mubr.bf16.mxu0 %v6669_v0  ;;  %650 = vmatprep.mubr.bf16.mxu1 %v6669_v0  ;;  %v5993_v3 = vld [vmem:[#allocation8 + $0xc] ss:$40 sps:$4 sm:$0xff]   ;;  %v5995_v4 = vld [vmem:[#allocation8 + $0x8] ss:$40 sps:$4 sm:$0xff]  }
  0xd2   : > { %577 = vmatprep.subr.bf16.mxu0 %v5990_v1  ;;  %v5996_v5 = vld [vmem:[#allocation8 + $0x54] ss:$40 sps:$4 sm:$0xff]   ;;  %v5998_v6 = vld [vmem:[#allocation8 + $0x50] ss:$40 sps:$4 sm:$0xff]   ;;  %618 = vmatprep.subr.bf16.mxu1 %v5993_v3  ;;  %vm573_vm1 = vcmask 261120   ;;  %vm2192_vm2 = vcmask 1040384  }
  0xd3   : > { %578 = vmatpush1.bf16.msra.mxu0 %v5992_v2  ;;  %v5999_v7 = vld [vmem:[#allocation8 + $0x5c] ss:$40 sps:$4 sm:$0xff]   ;;  %619 = vmatpush1.bf16.msra.mxu1 %v5995_v4  ;;  %v6001_v8 = vld [vmem:[#allocation8 + $0x58] ss:$40 sps:$4 sm:$0xff]   ;;  %v6013_v24 = vld [vmem:[#allocation8 + $0x6c] ss:$40 sps:$4 sm:$0xff]  }
  0xd4   : > { %579 = vmatprep.subr.bf16.mxu0 %v5996_v5  ;;  %620 = vmatprep.subr.bf16.mxu1 %v5999_v7  ;;  %v6004_v9 = vld [vmem:[#allocation8 + $0x14] ss:$40 sps:$4 sm:$0xff]   ;;  %v6002_v18 = vld [vmem:[#allocation8 + $0x10] ss:$40 sps:$4 sm:$0xff]   ;;  %v6010_v22 = vld [vmem:[#allocation8 + $0x64] ss:$40 sps:$4 sm:$0xff]  }
  0xd5   : > { %v374_v10 = vld [vmem:[%s318_s10] sm:$0xf]  ;;  %v5036_v12 = vld [vmem:[#allocation5] ss:$0 sm:$0xff]  ;;  %v5037_v13 = vld [vmem:[#allocation7] ss:$0 sm:$0xff] }
  0xd6   : > { %v375_v11 = vunpack.c.l.bf16 %v374_v10  ;;  %v6007_v14 = vld [vmem:[#allocation8 + $0x1c] ss:$40 sps:$4 sm:$0xff]   ;;  %v6005_v21 = vld [vmem:[#allocation8 + $0x18] ss:$40 sps:$4 sm:$0xff]   ;;  %v6011_v27 = vld [vmem:[#allocation8 + $0x68] ss:$40 sps:$4 sm:$0xff]  }
  0xd7   : > { %580 = vmatpush1.bf16.msra.mxu0 %v5998_v6  ;;  %621 = vmatpush1.bf16.msra.mxu1 %v6001_v8  ;;  %v6008_v26 = vld [vmem:[#allocation8 + $0x60] ss:$40 sps:$4 sm:$0xff]   ;;  %v6016_v28 = vld [vmem:[#allocation8 + $0x24] ss:$40 sps:$4 sm:$0xff]   ;;  %v6022_v33 = vld [vmem:[#allocation8 + $0x74] ss:$40 sps:$4 sm:$0xff]  }
  0xd8   : > { %659 = vmatprep.subr.bf16.mxu0 %v6004_v9  ;;  %v383_v15 = vmul.f32 %v5036_v12, %v375_v11  ;;  %700 = vmatprep.subr.bf16.mxu1 %v6007_v14  ;;  %v6019_v29 = vld [vmem:[#allocation8 + $0xac] ss:$40 sps:$4 sm:$0xff]   ;;  %v6014_v30 = vld [vmem:[#allocation8 + $0x20] ss:$40 sps:$4 sm:$0xff]   ;;  %v6025_v34 = vld [vmem:[#allocation8 + $0xfc] ss:$40 sps:$4 sm:$0xff]  }
  0xd9   : > { %v6017_v31 = vld [vmem:[#allocation8 + $0xa8] ss:$40 sps:$4 sm:$0xff]   ;;  %v6023_v36 = vld [vmem:[#allocation8 + $0xf8] ss:$40 sps:$4 sm:$0xff]   ;;  %v6028_v39 = vld [vmem:[#allocation8 + $0xa4] ss:$40 sps:$4 sm:$0xff]  }
  0xda   : > { %v391_v16 = vadd.f32 %v5037_v13, %v383_v15  ;;  %v6020_v35 = vld [vmem:[#allocation8 + $0x70] ss:$40 sps:$4 sm:$0xff]   ;;  %v6031_v40 = vld [vmem:[#allocation8 + $0xbc] ss:$40 sps:$4 sm:$0xff]   ;;  %v6026_v41 = vld [vmem:[#allocation8 + $0xa0] ss:$40 sps:$4 sm:$0xff]  }
  0xdb   : > { %v6029_v43 = vld [vmem:[#allocation8 + $0xb8] ss:$40 sps:$4 sm:$0xff]   ;;  %v6034_v44 = vld [vmem:[#allocation8 + $0xf4] ss:$40 sps:$4 sm:$0xff]   ;;  %v6035_v47 = vld [vmem:[#allocation8 + $0x108] ss:$40 sps:$4 sm:$0xff]  }
  0xdc   : > { %v393_v17 = vrot.slane %v391_v16, 6  ;;  %v6037_v45 = vld [vmem:[#allocation8 + $0x10c] ss:$40 sps:$4 sm:$0xff]   ;;  %v6032_v46 = vld [vmem:[#allocation8 + $0xf0] ss:$40 sps:$4 sm:$0xff]   ;;  %vm5244_vm3 = vmneg %vm2192_vm2  ;;  %s5035_s8 = sshll.u32 %s6964_s17, 3 }
  0xdd   : > { %v6040_v48 = vld [vmem:[#allocation8 + $0xb4] ss:$40 sps:$4 sm:$0xff]   ;;  %v6038_v50 = vld [vmem:[#allocation8 + $0xb0] ss:$40 sps:$4 sm:$0xff]   ;;  %v6046_v52 = vld [vmem:[#allocation8 + $0x104] ss:$40 sps:$4 sm:$0xff]  }
  0xde   : > { %v396_v19 = vsel %vm395_vm0, 0.0, %v393_v17  ;;  %v397_v20 = vsel %vm395_vm0, %v393_v17, 0.0  ;;  %v6043_v49 = vld [vmem:[#allocation8 + $0x14c] ss:$40 sps:$4 sm:$0xff]   ;;  %v6041_v51 = vld [vmem:[#allocation8 + $0x148] ss:$40 sps:$4 sm:$0xff]   ;;  %vm7105_vm4 = vmpackc.low %vm5244_vm3, %vm5244_vm3 }
  0xdf   : > { %v398_v23 = vpack.c.bf16 %v396_v19, %v396_v19  ;;  %v6987_v25 = vpack.c.bf16 %v397_v20, %v396_v19  ;;  %v6049_v53 = vld [vmem:[#allocation8 + $0x19c] ss:$40 sps:$4 sm:$0xff]   ;;  %v6044_v54 = vld [vmem:[#allocation8 + $0x100] ss:$40 sps:$4 sm:$0xff]   ;;  %v6061_v62 = vld [vmem:[#allocation8 + $0x1ac] ss:$40 sps:$4 sm:$0xff]  }
  0xe0   : > { %v6047_v55 = vld [vmem:[#allocation8 + $0x198] ss:$40 sps:$4 sm:$0xff]   ;;  %v6052_v56 = vld [vmem:[#allocation8 + $0xc4] ss:$40 sps:$4 sm:$0xff]   ;;  %v6058_v61 = vld [vmem:[#allocation8 + $0x114] ss:$40 sps:$4 sm:$0xff]  }
  0xe1   : > { %5058 = vmatmul.mubr.msk.bf16.vlgmr.msra.gmra.mrb[0].mxu0 %vm573_vm1, %v398_v23  ;;  %5059 = vmatmul.mubr.msk.bf16.vlgmr.msra.gmra.mrb[0].mxu1 %vm573_vm1, %v398_v23  ;;  %v807_v32 = vshll.u32 %v6987_v25, 16  ;;  %v805_v37 = vshrl.u32 %v6987_v25, 16  ;;  %v6055_v57 = vld [vmem:[#allocation8 + $0x15c] ss:$40 sps:$4 sm:$0xff]   ;;  %v6050_v58 = vld [vmem:[#allocation8 + $0xc0] ss:$40 sps:$4 sm:$0xff]  }
  0xe2   : > { %660 = vmatpush1.bf16.msra.mxu0 %v6002_v18  ;;  %701 = vmatpush1.bf16.msra.mxu1 %v6005_v21  ;;  %v7016_v59 = vrot.slane %v6987_v25, 1  ;;  %v6053_v60 = vld [vmem:[#allocation8 + $0x158] ss:$40 sps:$4 sm:$0xff]   ;;  %v6059_v1 = vld [vmem:[#allocation8 + $0x1a8] ss:$40 sps:$4 sm:$0xff]   ;;  %v7041_v21 = vrot.slane %v6987_v25, 2 }
  0xe3   : > { %661 = vmatprep.subr.bf16.mxu0 %v6010_v22  ;;  %702 = vmatprep.subr.bf16.mxu1 %v6013_v24  ;;  %v809_v38 = vrot.slane %v807_v32, 1  ;;  %v6056_v63 = vld [vmem:[#allocation8 + $0x110] ss:$40 sps:$4 sm:$0xff]   ;;  %v6064_v2 = vld [vmem:[#allocation8 + $0x144] ss:$40 sps:$4 sm:$0xff]   ;;  %v1491_v8 = vrot.slane %v805_v37, 1 }
  0xe4   : > { %691 = vmatprep.mubr.bf16.mxu0 %v6669_v0  ;;  %732 = vmatprep.mubr.bf16.mxu1 %v6669_v0  ;;  %v6067_v3 = vld [vmem:[#allocation8 + $0x1ec] ss:$40 sps:$4 sm:$0xff]   ;;  %v6062_v4 = vld [vmem:[#allocation8 + $0x140] ss:$40 sps:$4 sm:$0xff]   ;;  %v6073_v7 = vld [vmem:[#allocation8 + $0x23c] ss:$40 sps:$4 sm:$0xff]  }
  0xe5   : > { %v7002_v42 = vor.u32 %v809_v38, %v805_v37  ;;  %v6065_v5 = vld [vmem:[#allocation8 + $0x1e8] ss:$40 sps:$4 sm:$0xff]   ;;  %v6070_v6 = vld [vmem:[#allocation8 + $0x194] ss:$40 sps:$4 sm:$0xff]   ;;  %v6071_v10 = vld [vmem:[#allocation8 + $0x238] ss:$40 sps:$4 sm:$0xff]  }
  0xe6   : > { %662 = vmatpush1.bf16.msra.mxu0 %v6008_v26  ;;  %703 = vmatpush1.bf16.msra.mxu1 %v6011_v27  ;;  %v6068_v9 = vld [vmem:[#allocation8 + $0x190] ss:$40 sps:$4 sm:$0xff]   ;;  %v1492_v11 = vrot.slane %v807_v32, 2  ;;  %v6076_v12 = vld [vmem:[#allocation8 + $0x154] ss:$40 sps:$4 sm:$0xff]   ;;  %s5455_s13 = sshll.u32 %s6732_s30, 7 }
  0xe7   : > { %741 = vmatprep.subr.bf16.mxu0 %v6016_v28  ;;  %955 = vmatprep.subr.bf16.mxu1 %v6019_v29  ;;  %v6079_v13 = vld [vmem:[#allocation8 + $0x1fc] ss:$40 sps:$4 sm:$0xff]   ;;  %v6074_v14 = vld [vmem:[#allocation8 + $0x150] ss:$40 sps:$4 sm:$0xff]   ;;  %v6085_v18 = vld [vmem:[#allocation8 + $0x24c] ss:$40 sps:$4 sm:$0xff]   ;;  %s7276_s23 = scalar_lea.hbm %s7327_s7, %s5455_s13 }
  0xe8   : > { %v7034_v15 = vor.u32 %v1492_v11, %v1491_v8  ;;  %v6077_v16 = vld [vmem:[#allocation8 + $0x1f8] ss:$40 sps:$4 sm:$0xff]   ;;  %v6082_v17 = vld [vmem:[#allocation8 + $0x1a4] ss:$40 sps:$4 sm:$0xff]   ;;  %v6083_v20 = vld [vmem:[#allocation8 + $0x248] ss:$40 sps:$4 sm:$0xff]  }
  0xe9   : > { %5060 = vmatmul.mubr.msk.bf16.vlgmr.msra.gmra.mrb[4].mxu0 %vm573_vm1, %v398_v23  ;;  %5061 = vmatmul.mubr.msk.bf16.vlgmr.msra.gmra.mrb[4].mxu1 %vm573_vm1, %v398_v23  ;;  %v6080_v19 = vld [vmem:[#allocation8 + $0x1a0] ss:$40 sps:$4 sm:$0xff]   ;;  %v6088_v22 = vld [vmem:[#allocation8 + $0x164] ss:$40 sps:$4 sm:$0xff]   ;;  %v6094_v27 = vld [vmem:[#allocation8 + $0x1b4] ss:$40 sps:$4 sm:$0xff]  }
  0xea   : > { %742 = vmatpush1.bf16.msra.mxu0 %v6014_v30  ;;  %956 = vmatpush1.bf16.msra.mxu1 %v6017_v31  ;;  %v6086_v24 = vld [vmem:[#allocation8 + $0x160] ss:$40 sps:$4 sm:$0xff]   ;;  %v6097_v28 = vld [vmem:[#allocation8 + $0x2dc] ss:$40 sps:$4 sm:$0xff]   ;;  %v6092_v29 = vld [vmem:[#allocation8 + $0x1b0] ss:$40 sps:$4 sm:$0xff]  }
  0xeb   : > { %743 = vmatprep.subr.bf16.mxu0 %v6022_v33  ;;  %957 = vmatprep.subr.bf16.mxu1 %v6025_v34  ;;  %v6089_v26 = vld [vmem:[#allocation8 + $0x288] ss:$40 sps:$4 sm:$0xff]   ;;  %v6095_v30 = vld [vmem:[#allocation8 + $0x2d8] ss:$40 sps:$4 sm:$0xff]   ;;  %v6100_v25 = vld [vmem:[#allocation8 + $0x1e4] ss:$40 sps:$4 sm:$0xff]  }
  0xec   : > { %773 = vmatprep.mubr.bf16.mxu0 %v6669_v0  ;;  %987 = vmatprep.mubr.bf16.mxu1 %v6669_v0  ;;  %v6103_v31 = vld [vmem:[#allocation8 + $0x29c] ss:$40 sps:$4 sm:$0xff]   ;;  %v6098_v32 = vld [vmem:[#allocation8 + $0x1e0] ss:$40 sps:$4 sm:$0xff]   ;;  %s372_s12 = scalar_lea.vmem [#allocation14], %s5035_s8  ;;  %s4876_s20 = scalar_lea.sflag [#allocation4], %s6964_s17 }
  0xed   : > { %v6101_v33 = vld [vmem:[#allocation8 + $0x298] ss:$40 sps:$4 sm:$0xff]   ;;  %v6106_v34 = vld [vmem:[#allocation8 + $0x234] ss:$40 sps:$4 sm:$0xff]   ;;  %v6107_v37 = vld [vmem:[#allocation8 + $0x2e8] ss:$40 sps:$4 sm:$0xff]  }
  0xee   : > { %744 = vmatpush1.bf16.msra.mxu0 %v6020_v35  ;;  %958 = vmatpush1.bf16.msra.mxu1 %v6023_v36  ;;  %v6109_v35 = vld [vmem:[#allocation8 + $0x2ec] ss:$40 sps:$4 sm:$0xff]   ;;  %v6104_v36 = vld [vmem:[#allocation8 + $0x230] ss:$40 sps:$4 sm:$0xff]   ;;  %v6157_v11 = vld [vmem:[#allocation11 + $0x158] sm:$0xff]   ;;  %s4889_s15 = sshll.u32 %s372_s12, 4  ;;  %s7278_s15 = int_to_ptr.vmem [resolvable:$true] %s4889_s15 }
  0xef   : > { %914 = vmatprep.subr.bf16.mxu0 %v6028_v39  ;;  %1037 = vmatprep.subr.bf16.mxu1 %v6031_v40  ;;  %v6112_v38 = vld [vmem:[#allocation8 + $0x1f4] ss:$40 sps:$4 sm:$0xff]   ;;  %v6110_v39 = vld [vmem:[#allocation8 + $0x1f0] ss:$40 sps:$4 sm:$0xff]   ;;  %v6115_v40 = vld [vmem:[#allocation8 + $0x244] ss:$40 sps:$4 sm:$0xff]  }
  0xf0   : > { %v6154_v8 = vld [vmem:[#allocation11 + $0x20] sm:$0xff]   ;;  %s6578_s9 = scalar_lea.vmem %s7278_s15, 128  ;;  %p7351_p9 = scmp.ne.s32.totalorder %s7339_s29, 0 }
  0xf1   : > { %5062 = vmatmul.mubr.msk.bf16.vlgmr.msra.gmra.mrb[8].mxu0 %vm573_vm1, %v398_v23  ;;  %5084 = vmatmul.mubr.msk.bf16.vlgmr.msra.gmra.mrb[0].mxu1 %vm573_vm1, %v7002_v42  ;;  %v6091_v23 = vld [vmem:[#allocation8 + $0x28c] ss:$40 sps:$4 sm:$0xff]   ;;  %p6579_p6 = scmp.ne.s32.totalorder %s7278_s15, %s6578_s9  ;;  %s6670_s30 = smov [#allocation14]  }
  0xf2   : > { %915 = vmatpush1.bf16.msra.mxu0 %v6026_v41  ;;  %1038 = vmatpush1.bf16.msra.mxu1 %v6029_v43  ;;  %v6113_v41 = vld [vmem:[#allocation8 + $0x240] ss:$40 sps:$4 sm:$0xff]   ;;  %s6582_s14 = sshll.u32 %s6670_s30, 4  ;;  %s6583_s14 = int_to_ptr.vmem [resolvable:$false] %s6582_s14 }
  0xf3   : > { %916 = vmatprep.subr.bf16.mxu0 %v6034_v44  ;;  %1039 = vmatprep.subr.bf16.mxu1 %v6037_v45  ;;  %v6116_v43 = vld [vmem:[#allocation8 + $0x200] ss:$40 sps:$4 sm:$0xff]   ;;  %v6121_v44 = vld [vmem:[#allocation8 + $0x254] ss:$40 sps:$4 sm:$0xff]   ;;  %v6119_v45 = vld [vmem:[#allocation8 + $0x250] ss:$40 sps:$4 sm:$0xff]   ;;  %p6580_p4 = pnand %p6579_p6, %p7351_p9  ;;  %p6585_p1 = scmp.lt.s32.totalorder %s7278_s15, %s6583_s14 }
  0xf4   : > { %946 = vmatprep.mubr.bf16.mxu0 %v6669_v0  ;;  %1069 = vmatprep.mubr.bf16.mxu1 %v6669_v0  ;;  %s6584_s28 = scalar_lea.vmem %s6583_s14, 256 }
  0xf5   : > { %p6581_p13 = pneg %p6580_p4  ;;  %p6586_p3 = scmp.lt.s32.totalorder %s6584_s28, %s6578_s9 }
  0xf6   : > { %917 = vmatpush1.bf16.msra.mxu0 %v6032_v46  ;;  %1040 = vmatpush1.bf16.msra.mxu1 %v6035_v47  ;;  %v6124_v46 = vld [vmem:[#allocation8 + $0x284] ss:$40 sps:$4 sm:$0xff]   ;;  %v6122_v47 = vld [vmem:[#allocation8 + $0x280] ss:$40 sps:$4 sm:$0xff]  }
  0xf7   : > { %996 = vmatprep.subr.bf16.mxu0 %v6040_v48  ;;  %1296 = vmatprep.subr.bf16.mxu1 %v6043_v49  ;;  %v6127_v48 = vld [vmem:[#allocation8 + $0x2d4] ss:$40 sps:$4 sm:$0xff]   ;;  %v6125_v49 = vld [vmem:[#allocation8 + $0x2d0] ss:$40 sps:$4 sm:$0xff]   ;;  %p6587_p2 = por %p6586_p3, %p6585_p1 }
  0xf9   : > { %5083 = vmatmul.mubr.msk.bf16.vlgmr.msra.gmra.mrb[0].mxu0 %vm573_vm1, %v7002_v42  ;;  %5086 = vmatmul.mubr.msk.bf16.vlgmr.msra.gmra.mrb[4].mxu1 %vm573_vm1, %v7002_v42  ;;  %p6588_p0 = pnand %p6587_p2, %p6581_p13 }
  0xfa   : > { %997 = vmatpush1.bf16.msra.mxu0 %v6038_v50  ;;  %1297 = vmatpush1.bf16.msra.mxu1 %v6041_v51  ;;  %v6130_v50 = vld [vmem:[#allocation8 + $0x294] ss:$40 sps:$4 sm:$0xff]   ;;  %v6128_v51 = vld [vmem:[#allocation8 + $0x290] ss:$40 sps:$4 sm:$0xff]  }
  0xfb   : > { %998 = vmatprep.subr.bf16.mxu0 %v6046_v52  ;;  %1298 = vmatprep.subr.bf16.mxu1 %v6049_v53  ;;  %v6133_v52 = vld [vmem:[#allocation8 + $0x2e4] ss:$40 sps:$4 sm:$0xff]   ;;  %v6131_v53 = vld [vmem:[#allocation8 + $0x2e0] ss:$40 sps:$4 sm:$0xff]  }
  0xfc   : > { %1028 = vmatprep.mubr.bf16.mxu0 %v6669_v0  ;;  %1328 = vmatprep.mubr.bf16.mxu1 %v6669_v0 }
  0xfe   : > { %999 = vmatpush1.bf16.msra.mxu0 %v6044_v54  ;;  %1299 = vmatpush1.bf16.msra.mxu1 %v6047_v55  ;;  %v6136_v54 = vld [vmem:[#allocation8 + $0x2a4] ss:$40 sps:$4 sm:$0xff]   ;;  %v6134_v55 = vld [vmem:[#allocation8 + $0x2a0] ss:$40 sps:$4 sm:$0xff]  }
  0xff   : > { %1078 = vmatprep.subr.bf16.mxu0 %v6052_v56  ;;  %1378 = vmatprep.subr.bf16.mxu1 %v6055_v57  ;;  %v6139_v56 = vld [vmem:[#allocation8 + $0x2f4] ss:$40 sps:$4 sm:$0xff]   ;;  %v6137_v57 = vld [vmem:[#allocation8 + $0x2f0] ss:$40 sps:$4 sm:$0xff]  }
 0x101   : > { %5085 = vmatmul.mubr.msk.bf16.vlgmr.msra.gmra.mrb[4].mxu0 %vm573_vm1, %v7002_v42  ;;  %5109 = vmatmul.mubr.msk.bf16.vlgmr.msra.gmra.mrb[0].mxu1 %vm573_vm1, %v7016_v59 }
 0x102   : > { %1079 = vmatpush1.bf16.msra.mxu0 %v6050_v58  ;;  %1379 = vmatpush1.bf16.msra.mxu1 %v6053_v60  ;;  %v6140_v58 = vld [vmem:[#allocation11 + $0x40] sm:$0xff]   ;;  %v6142_v60 = vld [vmem:[#allocation11 + $0x48] sm:$0xff]  }
 0x103   : > { %1080 = vmatprep.subr.bf16.mxu0 %v6058_v61  ;;  %1380 = vmatprep.subr.bf16.mxu1 %v6061_v62  ;;  %v6143_v61 = vld [vmem:[#allocation11 + $0x8] sm:$0xff]   ;;  %v6144_v62 = vld [vmem:[#allocation11 + $0x50] sm:$0xff]  }
 0x104   : > { %1110 = vmatprep.mubr.bf16.mxu0 %v6669_v0  ;;  %1410 = vmatprep.mubr.bf16.mxu1 %v6669_v0 }
 0x106   : > { %1081 = vmatpush1.bf16.msra.mxu0 %v6056_v63  ;;  %1381 = vmatpush1.bf16.msra.mxu1 %v6059_v1  ;;  %v6145_v63 = vld [vmem:[#allocation11 + $0x140] sm:$0xff]   ;;  %v6146_v1 = vld [vmem:[#allocation11 + $0x10] sm:$0xff]  }
 0x107   : > { %1255 = vmatprep.subr.bf16.mxu0 %v6064_v2  ;;  %1638 = vmatprep.subr.bf16.mxu1 %v6067_v3  ;;  %v6147_v2 = vld [vmem:[#allocation11 + $0x100] sm:$0xff]   ;;  %v6148_v3 = vld [vmem:[#allocation11 + $0x58] sm:$0xff]  }
 0x109   : > { %5087 = vmatmul.mubr.msk.bf16.vlgmr.msra.gmra.mrb[8].mxu0 %vm573_vm1, %v7002_v42  ;;  %5111 = vmatmul.mubr.msk.bf16.vlgmr.msra.gmra.mrb[4].mxu1 %vm573_vm1, %v7016_v59  ;;  %v6118_v42 = vld [vmem:[#allocation8 + $0x204] ss:$40 sps:$4 sm:$0xff]  }
 0x10a   : > { %1256 = vmatpush1.bf16.msra.mxu0 %v6062_v4  ;;  %1639 = vmatpush1.bf16.msra.mxu1 %v6065_v5  ;;  %v6150_v4 = vld [vmem:[#allocation11 + $0x18] sm:$0xff]   ;;  %v6151_v5 = vld [vmem:[#allocation11 + $0x108] sm:$0xff]  }
 0x10b   : > { %1257 = vmatprep.subr.bf16.mxu0 %v6070_v6  ;;  %1640 = vmatprep.subr.bf16.mxu1 %v6073_v7  ;;  %v6152_v6 = vld [vmem:[#allocation11 + $0x60] sm:$0xff]   ;;  %v6153_v7 = vld [vmem:[#allocation11 + $0x150] sm:$0xff]  }
 0x10c   : > { %1287 = vmatprep.mubr.bf16.mxu0 %v6669_v0  ;;  %1670 = vmatprep.mubr.bf16.mxu1 %v6669_v0 }
 0x10e   : > { %1258 = vmatpush1.bf16.msra.mxu0 %v6068_v9  ;;  %1641 = vmatpush1.bf16.msra.mxu1 %v6071_v10  ;;  %v6155_v9 = vld [vmem:[#allocation11 + $0x110] sm:$0xff]   ;;  %v6156_v10 = vld [vmem:[#allocation11 + $0x68] sm:$0xff]  }
 0x10f   : > { %1337 = vmatprep.subr.bf16.mxu0 %v6076_v12  ;;  %1720 = vmatprep.subr.bf16.mxu1 %v6079_v13  ;;  %v6158_v12 = vld [vmem:[#allocation11 + $0x28] sm:$0xff]   ;;  %v6159_v13 = vld [vmem:[#allocation11 + $0x118] sm:$0xff]  }
 0x111   : > { %5108 = vmatmul.mubr.msk.bf16.vlgmr.msra.gmra.mrb[0].mxu0 %vm573_vm1, %v7016_v59  ;;  %5134 = vmatmul.mubr.msk.bf16.vlgmr.msra.gmra.mrb[0].mxu1 %vm573_vm1, %v7034_v15 }
 0x112   : > { %1338 = vmatpush1.bf16.msra.mxu0 %v6074_v14  ;;  %1721 = vmatpush1.bf16.msra.mxu1 %v6077_v16  ;;  %v6160_v14 = vld [vmem:[#allocation11 + $0x70] sm:$0xff]  }
 0x113   : > { %1339 = vmatprep.subr.bf16.mxu0 %v6082_v17  ;;  %1722 = vmatprep.subr.bf16.mxu1 %v6085_v18  ;;  %v6162_v16 = vld [vmem:[#allocation11 + $0x30] sm:$0xff]   ;;  %v6163_v17 = vld [vmem:[#allocation11 + $0x120] sm:$0xff]   ;;  %v6164_v18 = vld [vmem:[#allocation11 + $0x78] sm:$0xff]  }
 0x114   : > { %1369 = vmatprep.mubr.bf16.mxu0 %v6669_v0  ;;  %1752 = vmatprep.mubr.bf16.mxu1 %v6669_v0 }
 0x116   : > { %1340 = vmatpush1.bf16.msra.mxu0 %v6080_v19  ;;  %1723 = vmatpush1.bf16.msra.mxu1 %v6083_v20  ;;  %v6165_v19 = vld [vmem:[#allocation11 + $0x168] sm:$0xff]   ;;  %v6166_v20 = vld [vmem:[#allocation11 + $0x38] sm:$0xff]  }
 0x117   : > { %1419 = vmatprep.subr.bf16.mxu0 %v6088_v22  ;;  %1978 = vmatprep.subr.bf16.mxu1 %v6091_v23  ;;  %v6168_v22 = vld [vmem:[#allocation11 + $0xc0] sm:$0xff]   ;;  %v6169_v23 = vld [vmem:[#allocation11 + $0x170] sm:$0xff]  }
 0x119   : > { %5110 = vmatmul.mubr.msk.bf16.vlgmr.msra.gmra.mrb[4].mxu0 %vm573_vm1, %v7016_v59  ;;  %5136 = vmatmul.mubr.msk.bf16.vlgmr.msra.gmra.mrb[4].mxu1 %vm573_vm1, %v7034_v15 }
 0x11a   : > { %1420 = vmatpush1.bf16.msra.mxu0 %v6086_v24  ;;  %1979 = vmatpush1.bf16.msra.mxu1 %v6089_v26  ;;  %v6171_v24 = vld [vmem:[#allocation11 + $0x130] sm:$0xff]   ;;  %v6173_v26 = vld [vmem:[#allocation11 + $0x178] sm:$0xff]  }
 0x11b   : > { %1421 = vmatprep.subr.bf16.mxu0 %v6094_v27  ;;  %1980 = vmatprep.subr.bf16.mxu1 %v6097_v28  ;;  %v6175_v27 = vld [vmem:[#allocation11 + $0x138] sm:$0xff]   ;;  %v6177_v28 = vld [vmem:[#allocation11 + $0x240] sm:$0xff]  }
 0x11c   : > { %1451 = vmatprep.mubr.bf16.mxu0 %v6669_v0  ;;  %2010 = vmatprep.mubr.bf16.mxu1 %v6669_v0 }
 0x11e   : > { %1422 = vmatpush1.bf16.msra.mxu0 %v6092_v29  ;;  %1981 = vmatpush1.bf16.msra.mxu1 %v6095_v30 }
 0x11f   : > { %1597 = vmatprep.subr.bf16.mxu0 %v6100_v25  ;;  %2060 = vmatprep.subr.bf16.mxu1 %v6103_v31 }
 0x121   : > { %5112 = vmatmul.mubr.msk.bf16.vlgmr.msra.gmra.mrb[8].mxu0 %vm573_vm1, %v7016_v59  ;;  %5159 = vmatmul.mubr.msk.bf16.vlgmr.msra.gmra.mrb[0].mxu1 %vm573_vm1, %v7041_v21  ;;  %v6141_v59 = vld [vmem:[#allocation11] sm:$0xff]  }
 0x122   : > { %1598 = vmatpush1.bf16.msra.mxu0 %v6098_v32  ;;  %2061 = vmatpush1.bf16.msra.mxu1 %v6101_v33 }
 0x123   : > { %1599 = vmatprep.subr.bf16.mxu0 %v6106_v34  ;;  %2062 = vmatprep.subr.bf16.mxu1 %v6109_v35 }
 0x124   : > { %1629 = vmatprep.mubr.bf16.mxu0 %v6669_v0  ;;  %2092 = vmatprep.mubr.bf16.mxu1 %v6669_v0 }
 0x126   : > { %1600 = vmatpush1.bf16.msra.mxu0 %v6104_v36  ;;  %2063 = vmatpush1.bf16.msra.mxu1 %v6107_v37  ;;  %v423_v36 = vlaneseq }
 0x127   : > { %1679 = vmatprep.subr.bf16.mxu0 %v6112_v38  ;;  %5458 = vmatprep.subr.bf16.mxu1 %v6140_v58 }
 0x128   : > { %v7082_v37 = vshrl.u32 %v423_v36, 7  ;;  %v6184_v36 = vld [vmem:[#allocation11 + $0xe0] sm:$0xff]  }
 0x129   : > { %5133 = vmatmul.mubr.msk.bf16.vlgmr.msra.gmra.mrb[0].mxu0 %vm573_vm1, %v7034_v15  ;;  %5161 = vmatmul.mubr.msk.bf16.vlgmr.msra.gmra.mrb[4].mxu1 %vm573_vm1, %v7041_v21 }
 0x12a   : > { %1680 = vmatpush1.bf16.msra.mxu0 %v6110_v39  ;;  %1711 = vmatprep.mubr.bf16.mxu0 %v6669_v0  ;;  %v437_v38 = vsub.s32 3, %v7082_v37  ;;  %v7085_v39 = vld [vmem:[#allocation10] sm:$0xff] }
 0x12b   : > { %1681 = vmatprep.subr.bf16.mxu0 %v6115_v40  ;;  %5459 = vmatpush3.bf16.msra.mxu1 %v6141_v59  ;;  %v425_v40 = vsub.s32 0, %v7082_v37 }
 0x12c   : > { %5460 = vmatprep.subr.bf16.mxu1 %v6142_v60 }
 0x12e   : > { %1682 = vmatpush1.bf16.msra.mxu0 %v6113_v41  ;;  %v438_v41 = vrot.slane %v7085_v39, %v437_v38  ;;  %v6185_v38 = vld [vmem:[#allocation11 + $0x250] sm:$0xff]  }
 0x12f   : > { %1761 = vmatprep.subr.bf16.mxu0 %v6118_v42  ;;  %5461 = vmatpush3.bf16.msra.mxu1 %v6143_v61  ;;  %v429_v42 = vsub.s32 1, %v7082_v37 }
 0x130   : > { %5462 = vmatprep.subr.bf16.mxu1 %v6144_v62  ;;  %v6243_v62 = vld [vmem:[#allocation11 + $0x400] sm:$0xff]  }
 0x131   : > { %5135 = vmatmul.mubr.msk.bf16.vlgmr.msra.gmra.mrb[4].mxu0 %vm573_vm1, %v7034_v15 }
 0x132   : > { %1762 = vmatpush1.bf16.msra.mxu0 %v6116_v43  ;;  %1793 = vmatprep.mubr.bf16.mxu0 %v6669_v0  ;;  %v426_v43 = vrot.slane %v7085_v39, %v425_v40 }
 0x133   : > { %1763 = vmatprep.subr.bf16.mxu0 %v6121_v44  ;;  %5463 = vmatpush3.bf16.msra.mxu1 %v6146_v1 }
 0x134   : > { %5464 = vmatprep.subr.bf16.mxu1 %v6148_v3 }
 0x136   : > { %1764 = vmatpush1.bf16.msra.mxu0 %v6119_v45  ;;  %v430_v45 = vrot.slane %v7085_v39, %v429_v42 }
 0x137   : > { %1937 = vmatprep.subr.bf16.mxu0 %v6124_v46  ;;  %5465 = vmatpush3.bf16.msra.mxu1 %v6150_v4 }
 0x138   : > { %5466 = vmatprep.subr.bf16.mxu1 %v6152_v6 }
 0x139   : > { %5137 = vmatmul.mubr.msk.bf16.vlgmr.msra.gmra.mrb[8].mxu0 %vm573_vm1, %v7034_v15  ;;  %v6161_v15 = vld [vmem:[#allocation11 + $0x160] sm:$0xff]  }
 0x13a   : > { %1938 = vmatpush1.bf16.msra.mxu0 %v6122_v47  ;;  %1969 = vmatprep.mubr.bf16.mxu0 %v6669_v0 }
 0x13b   : > { %1939 = vmatprep.subr.bf16.mxu0 %v6127_v48  ;;  %5467 = vmatpush3.bf16.msra.mxu1 %v6154_v8 }
 0x13c   : > { %5468 = vmatprep.subr.bf16.mxu1 %v6156_v10 }
 0x13e   : > { %1940 = vmatpush1.bf16.msra.mxu0 %v6125_v49  ;;  %v441_v49 = vsub.s32 4, %v7082_v37 }
 0x13f   : > { %2019 = vmatprep.subr.bf16.mxu0 %v6130_v50  ;;  %5469 = vmatpush3.bf16.msra.mxu1 %v6158_v12 }
 0x140   : > { %5470 = vmatprep.subr.bf16.mxu1 %v6160_v14  ;;  %v442_v58 = vrot.slane %v7085_v39, %v441_v49 }
 0x141   : > { %5158 = vmatmul.mubr.msk.bf16.vlgmr.msra.gmra.mrb[0].mxu0 %vm573_vm1, %v7041_v21 }
 0x142   : > { %2020 = vmatpush1.bf16.msra.mxu0 %v6128_v51  ;;  %2051 = vmatprep.mubr.bf16.mxu0 %v6669_v0 }
 0x143   : > { %2021 = vmatprep.subr.bf16.mxu0 %v6133_v52  ;;  %5471 = vmatpush3.bf16.msra.mxu1 %v6162_v16 }
 0x144   : > { %5472 = vmatprep.subr.bf16.mxu1 %v6164_v18 }
 0x146   : > { %2022 = vmatpush1.bf16.msra.mxu0 %v6131_v53  ;;  %v445_v53 = vsub.s32 5, %v7082_v37 }
 0x147   : > { %2101 = vmatprep.subr.bf16.mxu0 %v6136_v54  ;;  %5473 = vmatpush3.bf16.msra.mxu1 %v6166_v20  ;;  %v6178_v20 = vld [vmem:[#allocation11 + $0x90] sm:$0xff]  }
 0x148   : > { %5480 = vmatprep.subr.bf16.mxu1 %v6168_v22  ;;  %v446_v61 = vrot.slane %v7085_v39, %v445_v53  ;;  %v6192_v53 = vld [vmem:[#allocation11 + $0xf0] sm:$0xff]  }
 0x149   : > { %5160 = vmatmul.mubr.msk.bf16.vlgmr.msra.gmra.mrb[4].mxu0 %vm573_vm1, %v7041_v21 }
 0x14a   : > { %2102 = vmatpush1.bf16.msra.mxu0 %v6134_v55  ;;  %2133 = vmatprep.mubr.bf16.mxu0 %v6669_v0  ;;  %v6149_v0 = vld [vmem:[#allocation11 + $0x148] sm:$0xff]  }
 0x14b   : > { %2103 = vmatprep.subr.bf16.mxu0 %v6139_v56 }
 0x14e   : > { %2104 = vmatpush1.bf16.msra.mxu0 %v6137_v57 }
 0x14f   : > { %5502 = vmatprep.subr.bf16.mxu0 %v6145_v63 }
 0x151   : > { %5162 = vmatmul.mubr.msk.bf16.vlgmr.msra.gmra.mrb[8].mxu0 %vm573_vm1, %v7041_v21  ;;  %v6167_v21 = vld [vmem:[#allocation11 + $0x128] sm:$0xff]  }
 0x152   : > { %5503 = vmatpush3.bf16.msra.mxu0 %v6147_v2  ;;  %v6170_v2 = vld [vmem:[#allocation11 + $0x80] sm:$0xff]  }
 0x153   : > { %5504 = vmatprep.subr.bf16.mxu0 %v6149_v0 }
 0x156   : > { %5505 = vmatpush3.bf16.msra.mxu0 %v6151_v5  ;;  %v6172_v5 = vld [vmem:[#allocation11 + $0xc8] sm:$0xff]  }
 0x157   : > { %5506 = vmatprep.subr.bf16.mxu0 %v6153_v7 }
 0x15a   : > { %5507 = vmatpush3.bf16.msra.mxu0 %v6155_v9 }
 0x15b   : > { %5508 = vmatprep.subr.bf16.mxu0 %v6157_v11  ;;  %v7119_v11 = vld [vmem:[#allocation10 + $0x8] sm:$0x3] }
 0x15e   : > { %5509 = vmatpush3.bf16.msra.mxu0 %v6159_v13  ;;  %v6174_v13 = vld [vmem:[#allocation11 + $0x88] sm:$0xff]  }
 0x15f   : > { %5510 = vmatprep.subr.bf16.mxu0 %v6161_v15  ;;  %v6176_v15 = vld [vmem:[#allocation11 + $0xd0] sm:$0xff]  }
 0x162   : > { %5511 = vmatpush3.bf16.msra.mxu0 %v6163_v17  ;;  %v462_v17 = vrot.slane %v7119_v11, %v429_v42 }
 0x163   : > { %5512 = vmatprep.subr.bf16.mxu0 %v6165_v19 }
 0x166   : > { %5513 = vmatpush3.bf16.msra.mxu0 %v6167_v21  ;;  %v6179_v21 = vld [vmem:[#allocation11 + $0x200] sm:$0xff]  }
 0x167   : > { %5514 = vmatprep.subr.bf16.mxu0 %v6169_v23 }
 0x16a   : > { %5515 = vmatpush3.bf16.msra.mxu0 %v6171_v24  ;;  %v6180_v24 = vld [vmem:[#allocation11 + $0xd8] sm:$0xff]  }
 0x16b   : > { %5516 = vmatprep.subr.bf16.mxu0 %v6173_v26  ;;  %v6181_v26 = vld [vmem:[#allocation11 + $0x248] sm:$0xff]  }
 0x16e   : > { %5517 = vmatpush3.bf16.msra.mxu0 %v6175_v27 }
 0x16f   : > { %5546 = vmatprep.subr.bf16.mxu0 %v6177_v28 }
 0x1f4   : > { %v7076_v29 = vpop.f32.mrb[0].mxu1 }
 0x1f5   : > { %v2014_v30 = vpop.f32.mrb[1].mxu1 }
 0x1f6   : > { %v2016_v25 = vpop.f32.mrb[2].mxu1  ;;  %v5791_v44 = vadd.f32 %v2014_v30, %v438_v41  ;;  %v453_v41 = vsub.s32 7, %v7082_v37 }
 0x1f7   : > { %v2017_v31 = vpop.f32.mrb[3].mxu1 }
 0x1f8   : > { %v2155_v50 = vmax.f32 %v5791_v44, 0.0  ;;  %v6182_v31 = vld [vmem:[#allocation11 + $0x98] sm:$0xff]   ;;  %v6186_v44 = vld [vmem:[#allocation11 + $0xa0] sm:$0xff]   ;;  %v454_v49 = vrot.slane %v7085_v39, %v453_v41 }
 0x1f9   : > { %v6216_v41 = vld [vmem:[#allocation11 + $0x1e0] sm:$0xff]  }
 0x1fa   : > { %v7100_v59 = vrot.slane %v2155_v50, 7  ;;  %v6190_v50 = vld [vmem:[#allocation11 + $0xa8] sm:$0xff]  }
 0x1fc   : > { %v7078_v32 = vpop.f32.mrb[4].mxu1  ;;  %v5257_v6 = vpack.c.bf16 %v7100_v59, %v7100_v59 }
 0x1fd   : > { %v7080_v33 = vpop.f32.mrb[5].mxu1 }
 0x1fe   : > { %v2098_v34 = vpop.f32.mrb[6].mxu1 }
 0x1ff   : > { %v2099_v35 = vpop.f32.mrb[7].mxu1  ;;  %v6183_v34 = vld [vmem:[#allocation11 + $0x208] sm:$0xff]  }
 0x200   : > { %v433_v35 = vsub.s32 2, %v7082_v37 }
 0x214   : > { %v1971_v46 = vpop.f32.mrb[0].mxu0 }
 0x215   : > { %v5788_v47 = vadd.f32 %v1971_v46, %v426_v43  ;;  %v1973_v48 = vpop.f32.mrb[1].mxu0  ;;  %v434_v46 = vrot.slane %v7085_v39, %v433_v35  ;;  %v6214_v35 = vld [vmem:[#allocation11 + $0x198] sm:$0xff]  }
 0x216   : > { %v5789_v51 = vadd.f32 %v1973_v48, %v430_v45  ;;  %v1975_v52 = vpop.f32.mrb[2].mxu0  ;;  %v6187_v45 = vld [vmem:[#allocation11 + $0x210] sm:$0xff]   ;;  %v6189_v48 = vld [vmem:[#allocation11 + $0x258] sm:$0xff]  }
 0x217   : > { %v2152_v54 = vmax.f32 %v5788_v47, 0.0  ;;  %v1976_v55 = vpop.f32.mrb[3].mxu0  ;;  %v6188_v47 = vld [vmem:[#allocation11 + $0xe8] sm:$0xff]   ;;  %v5790_v52 = vadd.f32 %v7076_v29, %v434_v46  ;;  %v458_v29 = vrot.slane %v7119_v11, %v425_v40  ;;  %v6203_v11 = vld [vmem:[#allocation11 + $0x230] sm:$0xff]  }
 0x218   : > { %v2153_v56 = vmax.f32 %v5789_v51, 0.0  ;;  %v6191_v51 = vld [vmem:[#allocation11 + $0x218] sm:$0xff]   ;;  %v5795_v55 = vadd.f32 %v7080_v33, %v454_v49  ;;  %v2206_v33 = vsel %vm2192_vm2, %v7100_v59, 0.0  ;;  %v6219_v46 = vld [vmem:[#allocation11 + $0x310] sm:$0xff]  }
 0x219   : > { %v7097_v57 = vrot.slane %v2152_v54, 7  ;;  %v6193_v54 = vld [vmem:[#allocation11 + $0x260] sm:$0xff]  }
 0x21a   : > { %v7102_v60 = vrot.slane %v2153_v56, 7  ;;  %v6194_v56 = vld [vmem:[#allocation11 + $0xb0] sm:$0xff]  }
 0x21b   : > { %v5252_v3 = vpack.c.bf16 %v7097_v57, %v7097_v57 }
 0x21c   : > { %v5247_v63 = vpack.c.bf16 %v7102_v60, %v7102_v60  ;;  %v2053_v1 = vpop.f32.mrb[4].mxu0  ;;  %v2204_v49 = vsel %vm2192_vm2, %v7102_v60, 0.0 }
 0x21d   : > { %v5792_v0 = vadd.f32 %v2053_v1, %v442_v58  ;;  %v2055_v4 = vpop.f32.mrb[5].mxu0  ;;  %v6195_v58 = vld [vmem:[#allocation11 + $0x220] sm:$0xff]   ;;  %v6197_v1 = vld [vmem:[#allocation11 + $0x268] sm:$0xff]  }
 0x21e   : > { %v5793_v7 = vadd.f32 %v2055_v4, %v446_v61  ;;  %v2057_v8 = vpop.f32.mrb[6].mxu0  ;;  %5248 = vmatprep.mubr.msk.bf16.mxu1 %vm7105_vm4, %v5247_v63  ;;  %v2154_v61 = vmax.f32 %v5790_v52, 0.0  ;;  %v6196_v63 = vld [vmem:[#allocation11 + $0xf8] sm:$0xff]   ;;  %v6199_v4 = vld [vmem:[#allocation11 + $0x228] sm:$0xff]  }
 0x21f   : > { %v2156_v9 = vmax.f32 %v5792_v0, 0.0  ;;  %v2058_v10 = vpop.f32.mrb[7].mxu0  ;;  %5253 = vmatmul.mubr.msk.bf16.vlgmr.msra.gmra.mrb[8].mxu1 %vm7105_vm4, %v5252_v3  ;;  %v2196_v3 = vsel %vm2192_vm2, 0.0, %v7100_v59  ;;  %v6198_v0 = vld [vmem:[#allocation11 + $0xb8] sm:$0xff]  }
 0x220   : > { %v2157_v12 = vmax.f32 %v5793_v7, 0.0  ;;  %5481 = vmatpush3.bf16.msra.mxu1 %v6170_v2  ;;  %5258 = vmatprep.mubr.msk.bf16.mxu1 %vm7105_vm4, %v5257_v6  ;;  %v2159_v2 = vmax.f32 %v5795_v55, 0.0  ;;  %v6200_v6 = vld [vmem:[#allocation11 + $0x1c0] sm:$0xff]   ;;  %v6201_v7 = vld [vmem:[#allocation11 + $0x270] sm:$0xff]   ;;  %v6223_v52 = vld [vmem:[#allocation11 + $0x318] sm:$0xff]  }
 0x221   : > { %v7123_v14 = vrot.slane %v2156_v9, 7  ;;  %5482 = vmatprep.subr.bf16.mxu1 %v6172_v5  ;;  %v7157_v5 = vrot.slane %v2154_v61, 7  ;;  %v7162_v9 = vpack.c.bf16 %v2206_v33, %v2196_v3  ;;  %v6202_v10 = vld [vmem:[#allocation11 + $0x180] sm:$0xff]   ;;  %v6226_v55 = vld [vmem:[#allocation11 + $0x1b0] sm:$0xff]   ;;  %v6228_v61 = vld [vmem:[#allocation11 + $0x1f8] sm:$0xff]  }
 0x222   : > { %v7125_v16 = vrot.slane %v2157_v12, 7  ;;  %v7159_v8 = vrot.slane %v2159_v2, 7  ;;  %v6204_v12 = vld [vmem:[#allocation11 + $0x1c8] sm:$0xff]   ;;  %v6230_v3 = vld [vmem:[#allocation11 + $0x1b8] sm:$0xff]  }
 0x223   : > { %v5272_v22 = vpack.c.bf16 %v7123_v14, %v7123_v14  ;;  %v5262_v59 = vpack.c.bf16 %v7157_v5, %v7157_v5 }
 0x224   : > { %v5267_v18 = vpack.c.bf16 %v7125_v16, %v7125_v16  ;;  %5483 = vmatpush3.bf16.msra.mxu1 %v6174_v13  ;;  %v7130_v19 = vpop.f32.mrb[8].mxu0  ;;  %v5277_v13 = vpack.c.bf16 %v7159_v8, %v7159_v8  ;;  %v2200_v2 = vsel %vm2192_vm2, 0.0, %v7159_v8 }
 0x225   : > { %v2137_v23 = vpop.f32.mrb[9].mxu0  ;;  %5484 = vmatprep.subr.bf16.mxu1 %v6176_v15  ;;  %v5796_v40 = vadd.f32 %v7130_v19, %v458_v29  ;;  %v6206_v19 = vld [vmem:[#allocation11 + $0x188] sm:$0xff]   ;;  %v2210_v29 = vsel %vm2192_vm2, %v7159_v8, 0.0 }
 0x226   : > { %v5797_v27 = vadd.f32 %v2137_v23, %v462_v17  ;;  %v2139_v28 = vpop.f32.mrb[10].mxu0  ;;  %5268 = vmatprep.mubr.msk.bf16.mxu0 %vm7105_vm4, %v5267_v18  ;;  %v6205_v17 = vld [vmem:[#allocation11 + $0x278] sm:$0xff]   ;;  %v3265_v18 = vshll.u32 %v7162_v9, 16  ;;  %v6209_v23 = vld [vmem:[#allocation11 + $0x340] sm:$0xff]  }
 0x227   : > { %v2140_v30 = vpop.f32.mrb[11].mxu0  ;;  %5273 = vmatmul.mubr.msk.bf16.vlgmr.msra.gmra.mrb[12].mxu0 %vm7105_vm4, %v5272_v22  ;;  %v2160_v15 = vmax.f32 %v5796_v40, 0.0  ;;  %v3263_v28 = vshrl.u32 %v7162_v9, 16 }
 0x228   : > { %v2161_v25 = vmax.f32 %v5797_v27, 0.0  ;;  %5485 = vmatpush3.bf16.msra.mxu1 %v6178_v20  ;;  %5547 = vmatpush3.bf16.msra.mxu0 %v6179_v21  ;;  %v6207_v20 = vld [vmem:[#allocation11 + $0x238] sm:$0xff]   ;;  %v6208_v21 = vld [vmem:[#allocation11 + $0x1d0] sm:$0xff]   ;;  %v6211_v27 = vld [vmem:[#allocation11 + $0x300] sm:$0xff]  }
 0x229   : > { %5486 = vmatprep.subr.bf16.mxu1 %v6180_v24  ;;  %5548 = vmatprep.subr.bf16.mxu0 %v6181_v26  ;;  %v7173_v22 = vrot.slane %v2160_v15, 7  ;;  %v3267_v24 = vrot.slane %v3265_v18, 1  ;;  %v6210_v26 = vld [vmem:[#allocation11 + $0x190] sm:$0xff]   ;;  %v6237_v15 = vld [vmem:[#allocation11 + $0x378] sm:$0xff]  }
 0x22a   : > { %v7140_v42 = vrot.slane %v2161_v25, 7  ;;  %v6212_v25 = vld [vmem:[#allocation11 + $0x1d8] sm:$0xff]  }
 0x22b   : > { %v5292_v30 = vpack.c.bf16 %v7173_v22, %v7173_v22 }
 0x22c   : > { %v5287_v43 = vpack.c.bf16 %v7140_v42, %v7140_v42  ;;  %5487 = vmatpush3.bf16.msra.mxu1 %v6182_v31  ;;  %5549 = vmatpush3.bf16.msra.mxu0 %v6183_v34  ;;  %v6213_v31 = vld [vmem:[#allocation11 + $0x348] sm:$0xff]   ;;  %v3268_v34 = vor.u32 %v3267_v24, %v3263_v28  ;;  %v6241_v24 = vld [vmem:[#allocation11 + $0x440] sm:$0xff]   ;;  %v6242_v28 = vld [vmem:[#allocation11 + $0x290] sm:$0xff]  }
 0x22d   : > { %5488 = vmatprep.subr.bf16.mxu1 %v6184_v36  ;;  %5550 = vmatprep.subr.bf16.mxu0 %v6185_v38  ;;  %v449_v36 = vsub.s32 6, %v7082_v37  ;;  %v6215_v38 = vld [vmem:[#allocation11 + $0x308] sm:$0xff]   ;;  %v2194_v37 = vsel %vm2192_vm2, 0.0, %v7102_v60 }
 0x22e   : > { %5288 = vmatprep.mubr.msk.bf16.mxu0 %vm7105_vm4, %v5287_v43  ;;  %v6217_v43 = vld [vmem:[#allocation11 + $0x350] sm:$0xff]   ;;  %v6229_v60 = vld [vmem:[#allocation11 + $0x368] sm:$0xff]  }
 0x230   : > { %5489 = vmatpush3.bf16.msra.mxu1 %v6186_v44  ;;  %5551 = vmatpush3.bf16.msra.mxu0 %v6187_v45  ;;  %v6218_v44 = vld [vmem:[#allocation11 + $0x1a0] sm:$0xff]   ;;  %v450_v45 = vrot.slane %v7085_v39, %v449_v36  ;;  %v6224_v39 = vld [vmem:[#allocation11 + $0x1f0] sm:$0xff]   ;;  %v6246_v36 = vld [vmem:[#allocation11 + $0x298] sm:$0xff]  }
 0x231   : > { %5490 = vmatprep.subr.bf16.mxu1 %v6188_v47  ;;  %5552 = vmatprep.subr.bf16.mxu0 %v6189_v48  ;;  %v6220_v47 = vld [vmem:[#allocation11 + $0x1e8] sm:$0xff]   ;;  %v6221_v48 = vld [vmem:[#allocation11 + $0x358] sm:$0xff]  }
 0x234   : > { %5491 = vmatpush3.bf16.msra.mxu1 %v6190_v50  ;;  %5553 = vmatpush3.bf16.msra.mxu0 %v6191_v51  ;;  %v6222_v50 = vld [vmem:[#allocation11 + $0x1a8] sm:$0xff]   ;;  %v5794_v51 = vadd.f32 %v7078_v32, %v450_v45  ;;  %v2195_v32 = vsel %vm2192_vm2, 0.0, %v7157_v5  ;;  %v6251_v45 = vld [vmem:[#allocation11 + $0x410] sm:$0xff]  }
 0x235   : > { %5492 = vmatprep.subr.bf16.mxu1 %v6192_v53  ;;  %5554 = vmatprep.subr.bf16.mxu0 %v6193_v54  ;;  %v7187_v53 = vpack.c.bf16 %v2204_v49, %v2194_v37  ;;  %v6225_v54 = vld [vmem:[#allocation11 + $0x360] sm:$0xff]   ;;  %v6253_v37 = vld [vmem:[#allocation11 + $0x458] sm:$0xff]   ;;  %v2198_v49 = vsel %vm2192_vm2, 0.0, %v7125_v16 }
 0x238   : > { %5493 = vmatpush3.bf16.msra.mxu1 %v6194_v56  ;;  %5555 = vmatpush3.bf16.msra.mxu0 %v6195_v58  ;;  %v2158_v56 = vmax.f32 %v5794_v51, 0.0  ;;  %v6227_v58 = vld [vmem:[#allocation11 + $0x320] sm:$0xff]   ;;  %v6254_v51 = vld [vmem:[#allocation11 + $0x2a8] sm:$0xff]  }
 0x239   : > { %5494 = vmatprep.subr.bf16.mxu1 %v6196_v63  ;;  %5556 = vmatprep.subr.bf16.mxu0 %v6197_v1  ;;  %v3251_v63 = vshll.u32 %v7187_v53, 16  ;;  %v2205_v1 = vsel %vm2192_vm2, %v7157_v5, 0.0  ;;  %v7202_v5 = vpack.c.bf16 %v2210_v29, %v2200_v2  ;;  %v6262_v2 = vld [vmem:[#allocation11 + $0x2b8] sm:$0xff]   ;;  %v6263_v29 = vld [vmem:[#allocation11 + $0x428] sm:$0xff]  }
 0x23a   : > { %v7198_v33 = vrot.slane %v2158_v56, 7  ;;  %v6258_v56 = vld [vmem:[#allocation11 + $0x2b0] sm:$0xff]  }
 0x23b   : > { %v3253_v40 = vrot.slane %v3251_v63, 1  ;;  %v3293_v18 = vshll.u32 %v7202_v5, 16 }
 0x23c   : > { %5495 = vmatpush3.bf16.msra.mxu1 %v6198_v0  ;;  %5557 = vmatpush3.bf16.msra.mxu0 %v6199_v4  ;;  %v6231_v0 = vld [vmem:[#allocation11 + $0x328] sm:$0xff]   ;;  %v6232_v4 = vld [vmem:[#allocation11 + $0x2c0] sm:$0xff]   ;;  %v5282_v8 = vpack.c.bf16 %v7198_v33, %v7198_v33 }
 0x23d   : > { %5524 = vmatprep.subr.bf16.mxu1 %v6200_v6  ;;  %5558 = vmatprep.subr.bf16.mxu0 %v6201_v7  ;;  %v7200_v6 = vpack.c.bf16 %v2205_v1, %v2195_v32  ;;  %v6233_v7 = vld [vmem:[#allocation11 + $0x370] sm:$0xff]   ;;  %v2199_v32 = vsel %vm2192_vm2, 0.0, %v7198_v33  ;;  %v2209_v1 = vsel %vm2192_vm2, %v7198_v33, 0.0 }
 0x23f   : > { %5263 = vmatmul.mubr.msk.bf16.vlgmr.msra.gmra.mrb[12].mxu1 %vm7105_vm4, %v5262_v59  ;;  %v3249_v59 = vshrl.u32 %v7187_v53, 16 }
 0x240   : > { %5525 = vmatpush3.bf16.msra.mxu1 %v6202_v10  ;;  %5278 = vmatprep.mubr.msk.bf16.mxu1 %vm7105_vm4, %v5277_v13  ;;  %v6234_v10 = vld [vmem:[#allocation11 + $0x280] sm:$0xff]  }
 0x241   : > { %5559 = vmatpush3.bf16.msra.mxu0 %v6203_v11  ;;  %5526 = vmatprep.subr.bf16.mxu1 %v6204_v12  ;;  %v6235_v11 = vld [vmem:[#allocation11 + $0x330] sm:$0xff]   ;;  %v6236_v12 = vld [vmem:[#allocation11 + $0x2c8] sm:$0xff]   ;;  %v3254_v13 = vor.u32 %v3253_v40, %v3249_v59  ;;  %v6266_v59 = vld [vmem:[#allocation11 + $0x380] sm:$0xff]  }
 0x242   : > { %5560 = vmatprep.subr.bf16.mxu0 %v6205_v17  ;;  %v3258_v17 = vshll.u32 %v7200_v6, 16 }
 0x244   : > { %5527 = vmatpush3.bf16.msra.mxu1 %v6206_v19  ;;  %v6238_v19 = vld [vmem:[#allocation11 + $0x288] sm:$0xff]  }
 0x245   : > { %5561 = vmatpush3.bf16.msra.mxu0 %v6207_v20  ;;  %5528 = vmatprep.subr.bf16.mxu1 %v6208_v21  ;;  %v6239_v20 = vld [vmem:[#allocation11 + $0x338] sm:$0xff]   ;;  %v6240_v21 = vld [vmem:[#allocation11 + $0x2d0] sm:$0xff]  }
 0x246   : > { %5590 = vmatprep.subr.bf16.mxu0 %v6209_v23  ;;  %v3260_v23 = vrot.slane %v3258_v17, 1 }
 0x248   : > { %5293 = vmatmul.mubr.msk.bf16.vlgmr.msra.gmra.mrb[16].mxu0 %vm7105_vm4, %v5292_v30  ;;  %5529 = vmatpush3.bf16.msra.mxu1 %v6210_v26  ;;  %v3295_v26 = vrot.slane %v3293_v18, 1  ;;  %v3291_v30 = vshrl.u32 %v7202_v5, 16  ;;  %v6270_v18 = vld [vmem:[#allocation11 + $0x388] sm:$0xff]  }
 0x249   : > { %5591 = vmatpush3.bf16.msra.mxu0 %v6211_v27  ;;  %3873 = vmatprep.mubr.bf16.mxu0 %v3268_v34  ;;  %v3256_v27 = vshrl.u32 %v7200_v6, 16  ;;  %v6245_v34 = vld [vmem:[#allocation11 + $0x448] sm:$0xff]  }
 0x24a   : > { %5530 = vmatprep.subr.bf16.mxu1 %v6212_v25  ;;  %5592 = vmatprep.subr.bf16.mxu0 %v6213_v31  ;;  %v6244_v31 = vld [vmem:[#allocation11 + $0x2d8] sm:$0xff]  }
 0x24b   : > { %v3261_v25 = vor.u32 %v3260_v23, %v3256_v27  ;;  %v6273_v23 = vld [vmem:[#allocation11 + $0x540] sm:$0xff]  }
 0x24c   : > { %5531 = vmatpush3.bf16.msra.mxu1 %v6214_v35  ;;  %v3296_v35 = vor.u32 %v3295_v26, %v3291_v30  ;;  %v6274_v26 = vld [vmem:[#allocation11 + $0x390] sm:$0xff]   ;;  %v6275_v27 = vld [vmem:[#allocation11 + $0x500] sm:$0xff]   ;;  %v6277_v30 = vld [vmem:[#allocation11 + $0x548] sm:$0xff]  }
 0x24d   : > { %5593 = vmatpush3.bf16.msra.mxu0 %v6215_v38  ;;  %5532 = vmatprep.subr.bf16.mxu1 %v6216_v41  ;;  %v6247_v38 = vld [vmem:[#allocation11 + $0x408] sm:$0xff]   ;;  %v6248_v41 = vld [vmem:[#allocation11 + $0x2e0] sm:$0xff]  }
 0x24e   : > { %5594 = vmatprep.subr.bf16.mxu0 %v6217_v43  ;;  %v6249_v43 = vld [vmem:[#allocation11 + $0x450] sm:$0xff]  }
 0x250   : > { %5533 = vmatpush3.bf16.msra.mxu1 %v6218_v44  ;;  %v6250_v44 = vld [vmem:[#allocation11 + $0x2a0] sm:$0xff]  }
 0x251   : > { %5595 = vmatpush3.bf16.msra.mxu0 %v6219_v46  ;;  %5534 = vmatprep.subr.bf16.mxu1 %v6220_v47  ;;  %v6252_v46 = vld [vmem:[#allocation11 + $0x2e8] sm:$0xff]   ;;  %v2193_v47 = vsel %vm2192_vm2, 0.0, %v7097_v57 }
 0x252   : > { %5596 = vmatprep.subr.bf16.mxu0 %v6221_v48  ;;  %v2203_v48 = vsel %vm2192_vm2, %v7097_v57, 0.0  ;;  %v6257_v57 = vld [vmem:[#allocation11 + $0x460] sm:$0xff]  }
 0x254   : > { %5535 = vmatpush3.bf16.msra.mxu1 %v6222_v50  ;;  %v2208_v50 = vsel %vm2192_vm2, %v7125_v16, 0.0 }
 0x255   : > { %5597 = vmatpush3.bf16.msra.mxu0 %v6223_v52  ;;  %5536 = vmatprep.subr.bf16.mxu1 %v6224_v39  ;;  %v7221_v52 = vpack.c.bf16 %v2203_v48, %v2193_v47  ;;  %v6255_v39 = vld [vmem:[#allocation11 + $0x418] sm:$0xff]   ;;  %v2212_v47 = vsel %vm2192_vm2, %v7140_v42, 0.0  ;;  %v6286_v48 = vld [vmem:[#allocation11 + $0x3a8] sm:$0xff]  }
 0x256   : > { %5598 = vmatprep.subr.bf16.mxu0 %v6225_v54  ;;  %v6256_v54 = vld [vmem:[#allocation11 + $0x2f0] sm:$0xff]  }
 0x257   : > { %v3244_v16 = vshll.u32 %v7221_v52, 16 }
 0x258   : > { %5537 = vmatpush3.bf16.msra.mxu1 %v6226_v55  ;;  %v7223_v55 = vpack.c.bf16 %v2208_v50, %v2198_v49  ;;  %v6287_v49 = vld [vmem:[#allocation11 + $0x518] sm:$0xff]   ;;  %v6288_v50 = vld [vmem:[#allocation11 + $0x3f0] sm:$0xff]  }
 0x259   : > { %5599 = vmatpush3.bf16.msra.mxu0 %v6227_v58  ;;  %5538 = vmatprep.subr.bf16.mxu1 %v6228_v61  ;;  %v6259_v58 = vld [vmem:[#allocation11 + $0x420] sm:$0xff]   ;;  %v6260_v61 = vld [vmem:[#allocation11 + $0x2f8] sm:$0xff]  }
 0x25a   : > { %5600 = vmatprep.subr.bf16.mxu0 %v6229_v60  ;;  %v6261_v60 = vld [vmem:[#allocation11 + $0x468] sm:$0xff]   ;;  %v3279_v63 = vshll.u32 %v7223_v55, 16 }
 0x25c   : > { %5539 = vmatpush3.bf16.msra.mxu1 %v6230_v3  ;;  %v3246_v3 = vrot.slane %v3244_v16, 1  ;;  %v3281_v40 = vrot.slane %v3279_v63, 1  ;;  %v6295_v16 = vld [vmem:[#allocation11 + $0x528] sm:$0xff]   ;;  %v6296_v63 = vld [vmem:[#allocation11 + $0x4c0] sm:$0xff]  }
 0x25d   : > { %5601 = vmatpush3.bf16.msra.mxu0 %v6231_v0  ;;  %5568 = vmatprep.subr.bf16.mxu1 %v6232_v4  ;;  %v6264_v0 = vld [vmem:[#allocation11 + $0x3c0] sm:$0xff]   ;;  %v7231_v4 = vpack.c.bf16 %v2209_v1, %v2199_v32  ;;  %v6297_v32 = vld [vmem:[#allocation11 + $0x570] sm:$0xff]  }
 0x25e   : > { %5602 = vmatprep.subr.bf16.mxu0 %v6233_v7  ;;  %v6265_v7 = vld [vmem:[#allocation11 + $0x470] sm:$0xff]  }
 0x25f   : > { %5283 = vmatmul.mubr.msk.bf16.vlgmr.msra.gmra.mrb[16].mxu1 %vm7105_vm4, %v5282_v8  ;;  %v3277_v8 = vshrl.u32 %v7223_v55, 16  ;;  %v3286_v17 = vshll.u32 %v7231_v4, 16 }
 0x260   : > { %5569 = vmatpush3.bf16.msra.mxu1 %v6234_v10  ;;  %3833 = vmatprep.mubr.bf16.mxu1 %v3254_v13  ;;  %v3242_v10 = vshrl.u32 %v7221_v52, 16 }
 0x261   : > { %5603 = vmatpush3.bf16.msra.mxu0 %v6235_v11  ;;  %5570 = vmatprep.subr.bf16.mxu1 %v6236_v12  ;;  %v6267_v11 = vld [vmem:[#allocation11 + $0x430] sm:$0xff]   ;;  %v6268_v12 = vld [vmem:[#allocation11 + $0x3c8] sm:$0xff]   ;;  %v3282_v13 = vor.u32 %v3281_v40, %v3277_v8 }
 0x262   : > { %5604 = vmatprep.subr.bf16.mxu0 %v6237_v15  ;;  %v3247_v33 = vor.u32 %v3246_v3, %v3242_v10  ;;  %v6269_v15 = vld [vmem:[#allocation11 + $0x478] sm:$0xff]   ;;  %v6300_v40 = vld [vmem:[#allocation11 + $0x4c8] sm:$0xff]  }
 0x263   : > { %v6302_v8 = vld [vmem:[#allocation11 + $0x488] sm:$0xff]  }
 0x264   : > { %5571 = vmatpush3.bf16.msra.mxu1 %v6238_v19  ;;  %v6271_v19 = vld [vmem:[#allocation11 + $0x438] sm:$0xff]  }
 0x265   : > { %5605 = vmatpush3.bf16.msra.mxu0 %v6239_v20  ;;  %5572 = vmatprep.subr.bf16.mxu1 %v6240_v21  ;;  %v6272_v20 = vld [vmem:[#allocation11 + $0x3d0] sm:$0xff]   ;;  %v3288_v21 = vrot.slane %v3286_v17, 1  ;;  %v4173_v17 = vrot.slane %v7221_v52, 1 }
 0x266   : > { %5634 = vmatprep.subr.bf16.mxu0 %v6241_v24  ;;  %v3284_v24 = vshrl.u32 %v7231_v4, 16  ;;  %v6315_v52 = vld [vmem:[#allocation11 + $0x610] sm:$0xff]  }
 0x268   : > { %3874 = vmatmul.mubr.bf16.vlgmr.msra.gmra.mrb[20].mxu0 %v3261_v25  ;;  %5573 = vmatpush3.bf16.msra.mxu1 %v6242_v28  ;;  %v3289_v28 = vor.u32 %v3288_v21, %v3284_v24  ;;  %v4174_v25 = vrot.slane %v7187_v53, 1  ;;  %v2207_v53 = vsel %vm2192_vm2, %v7123_v14, 0.0  ;;  %v6310_v21 = vld [vmem:[#allocation11 + $0x498] sm:$0xff]   ;;  %v6312_v24 = vld [vmem:[#allocation11 + $0x4e0] sm:$0xff]  }
 0x269   : > { %5635 = vmatpush3.bf16.msra.mxu0 %v6243_v62  ;;  %3953 = vmatprep.mubr.bf16.mxu0 %v3296_v35  ;;  %v6276_v62 = vld [vmem:[#allocation11 + $0x3d8] sm:$0xff]   ;;  %v6280_v35 = vld [vmem:[#allocation11 + $0x3e0] sm:$0xff]  }
 0x26a   : > { %5574 = vmatprep.subr.bf16.mxu1 %v6244_v31  ;;  %5636 = vmatprep.subr.bf16.mxu0 %v6245_v34  ;;  %v6278_v31 = vld [vmem:[#allocation11 + $0x398] sm:$0xff]   ;;  %v6279_v34 = vld [vmem:[#allocation11 + $0x508] sm:$0xff]  }
 0x26c   : > { %5575 = vmatpush3.bf16.msra.mxu1 %v6246_v36  ;;  %v6281_v36 = vld [vmem:[#allocation11 + $0x550] sm:$0xff]  }
 0x26d   : > { %5637 = vmatpush3.bf16.msra.mxu0 %v6247_v38  ;;  %5576 = vmatprep.subr.bf16.mxu1 %v6248_v41  ;;  %v6282_v38 = vld [vmem:[#allocation11 + $0x3a0] sm:$0xff]   ;;  %v6283_v41 = vld [vmem:[#allocation11 + $0x510] sm:$0xff]  }
 0x26e   : > { %5638 = vmatprep.subr.bf16.mxu0 %v6249_v43  ;;  %v6284_v43 = vld [vmem:[#allocation11 + $0x3e8] sm:$0xff]  }
 0x270   : > { %5577 = vmatpush3.bf16.msra.mxu1 %v6250_v44  ;;  %v2197_v44 = vsel %vm2192_vm2, 0.0, %v7123_v14  ;;  %v6289_v14 = vld [vmem:[#allocation11 + $0x560] sm:$0xff]  }
 0x271   : > { %5639 = vmatpush3.bf16.msra.mxu0 %v6251_v45  ;;  %5578 = vmatprep.subr.bf16.mxu1 %v6252_v46  ;;  %v6285_v45 = vld [vmem:[#allocation11 + $0x558] sm:$0xff]   ;;  %v2202_v46 = vsel %vm2192_vm2, 0.0, %v7140_v42 }
 0x272   : > { %5640 = vmatprep.subr.bf16.mxu0 %v6253_v37  ;;  %v7246_v37 = vpack.c.bf16 %v2207_v53, %v2197_v44  ;;  %v6325_v44 = vld [vmem:[#allocation11 + $0x668] sm:$0xff]   ;;  %v6326_v53 = vld [vmem:[#allocation11 + $0x4b8] sm:$0xff]  }
 0x274   : > { %5579 = vmatpush3.bf16.msra.mxu1 %v6254_v51  ;;  %v7248_v51 = vpack.c.bf16 %v2212_v47, %v2202_v46  ;;  %v3272_v42 = vshll.u32 %v7246_v37, 16  ;;  %v6328_v47 = vld [vmem:[#allocation11 + $0x5c0] sm:$0xff]  }
 0x275   : > { %5641 = vmatpush3.bf16.msra.mxu0 %v6255_v39  ;;  %5580 = vmatprep.subr.bf16.mxu1 %v6256_v54  ;;  %v6290_v39 = vld [vmem:[#allocation11 + $0x3b0] sm:$0xff]   ;;  %v6291_v54 = vld [vmem:[#allocation11 + $0x520] sm:$0xff]  }
 0x276   : > { %5642 = vmatprep.subr.bf16.mxu0 %v6257_v57  ;;  %v6292_v57 = vld [vmem:[#allocation11 + $0x3f8] sm:$0xff]   ;;  %v3305_v3 = vshrl.u32 %v7248_v51, 16 }
 0x278   : > { %5581 = vmatpush3.bf16.msra.mxu1 %v6258_v56  ;;  %v6293_v56 = vld [vmem:[#allocation11 + $0x568] sm:$0xff]  }
 0x279   : > { %5643 = vmatpush3.bf16.msra.mxu0 %v6259_v58  ;;  %5582 = vmatprep.subr.bf16.mxu1 %v6260_v61  ;;  %v3307_v58 = vshll.u32 %v7248_v51, 16  ;;  %v6294_v61 = vld [vmem:[#allocation11 + $0x3b8] sm:$0xff]  }
 0x27a   : > { %5644 = vmatprep.subr.bf16.mxu0 %v6261_v60  ;;  %v3274_v60 = vrot.slane %v3272_v42, 1  ;;  %v6333_v42 = vld [vmem:[#allocation11 + $0x678] sm:$0xff]  }
 0x27b   : > { %v3309_v1 = vrot.slane %v3307_v58, 1  ;;  %v6335_v58 = vld [vmem:[#allocation11 + $0x638] sm:$0xff]  }
 0x27c   : > { %5583 = vmatpush3.bf16.msra.mxu1 %v6262_v2  ;;  %v3270_v2 = vshrl.u32 %v7246_v37, 16 }
 0x27d   : > { %5645 = vmatpush3.bf16.msra.mxu0 %v6263_v29  ;;  %5612 = vmatprep.subr.bf16.mxu1 %v6264_v0  ;;  %v6298_v29 = vld [vmem:[#allocation11 + $0x480] sm:$0xff]   ;;  %v3310_v10 = vor.u32 %v3309_v1, %v3305_v3  ;;  %v6341_v1 = vld [vmem:[#allocation11 + $0x748] sm:$0xff]  }
 0x27e   : > { %5646 = vmatprep.subr.bf16.mxu0 %v6265_v7  ;;  %v3275_v0 = vor.u32 %v3274_v60, %v3270_v2  ;;  %v6299_v7 = vld [vmem:[#allocation11 + $0x530] sm:$0xff]   ;;  %v4182_v2 = vrot.slane %v7248_v51, 1  ;;  %v6343_v3 = vld [vmem:[#allocation11 + $0x708] sm:$0xff]  }
 0x27f   : > { %3834 = vmatmul.mubr.bf16.vlgmr.msra.gmra.mrb[20].mxu1 %v3247_v33  ;;  %v6303_v33 = vld [vmem:[#allocation11 + $0x538] sm:$0xff]   ;;  %v6338_v60 = vld [vmem:[#allocation11 + $0x590] sm:$0xff]   ;;  %v6350_v51 = vld [vmem:[#allocation11 + $0x5a8] sm:$0xff]  }
 0x280   : > { %5613 = vmatpush3.bf16.msra.mxu1 %v6266_v59  ;;  %3913 = vmatprep.mubr.bf16.mxu1 %v3282_v13  ;;  %v6301_v59 = vld [vmem:[#allocation11 + $0x578] sm:$0xff]   ;;  %v6306_v13 = vld [vmem:[#allocation11 + $0x490] sm:$0xff]  }
 0x281   : > { %5647 = vmatpush3.bf16.msra.mxu0 %v6267_v11  ;;  %5614 = vmatprep.subr.bf16.mxu1 %v6268_v12  ;;  %v6304_v11 = vld [vmem:[#allocation11 + $0x4d0] sm:$0xff]   ;;  %v6305_v12 = vld [vmem:[#allocation11 + $0x640] sm:$0xff]  }
 0x282   : > { %5648 = vmatprep.subr.bf16.mxu0 %v6269_v15  ;;  %v6307_v15 = vld [vmem:[#allocation11 + $0x600] sm:$0xff]  }
 0x284   : > { %5615 = vmatpush3.bf16.msra.mxu1 %v6270_v18  ;;  %v6308_v18 = vld [vmem:[#allocation11 + $0x4d8] sm:$0xff]  }
 0x285   : > { %5649 = vmatpush3.bf16.msra.mxu0 %v6271_v19  ;;  %5616 = vmatprep.subr.bf16.mxu1 %v6272_v20  ;;  %v6309_v19 = vld [vmem:[#allocation11 + $0x648] sm:$0xff]   ;;  %v4178_v20 = vrot.slane %v7223_v55, 1  ;;  %v2211_v55 = vsel %vm2192_vm2, %v7173_v22, 0.0 }
 0x286   : > { %5678 = vmatprep.subr.bf16.mxu0 %v6273_v23  ;;  %v6311_v23 = vld [vmem:[#allocation11 + $0x608] sm:$0xff]  }
 0x288   : > { %3954 = vmatmul.mubr.bf16.vlgmr.msra.gmra.mrb[24].mxu0 %v3289_v28  ;;  %5617 = vmatpush3.bf16.msra.mxu1 %v6274_v26  ;;  %v6313_v26 = vld [vmem:[#allocation11 + $0x650] sm:$0xff]   ;;  %v6316_v28 = vld [vmem:[#allocation11 + $0x4e8] sm:$0xff]  }
 0x289   : > { %5679 = vmatpush3.bf16.msra.mxu0 %v6275_v27  ;;  %4705 = vmatprep.mubr.bf16.mxu0 %v4174_v25  ;;  %v6314_v27 = vld [vmem:[#allocation11 + $0x4a0] sm:$0xff]   ;;  %v6318_v25 = vld [vmem:[#allocation11 + $0x4a8] sm:$0xff]  }
 0x28a   : > { %5618 = vmatprep.subr.bf16.mxu1 %v6276_v62  ;;  %5680 = vmatprep.subr.bf16.mxu0 %v6277_v30  ;;  %v2201_v62 = vsel %vm2192_vm2, 0.0, %v7173_v22  ;;  %v6317_v30 = vld [vmem:[#allocation11 + $0x658] sm:$0xff]  }
 0x28c   : > { %5619 = vmatpush3.bf16.msra.mxu1 %v6278_v31  ;;  %v7260_v31 = vpack.c.bf16 %v2211_v55, %v2201_v62  ;;  %v6366_v62 = vld [vmem:[#allocation11 + $0x688] sm:$0xff]   ;;  %v6367_v55 = vld [vmem:[#allocation11 + $0x738] sm:$0xff]  }
 0x28d   : > { %5681 = vmatpush3.bf16.msra.mxu0 %v6279_v34  ;;  %5620 = vmatprep.subr.bf16.mxu1 %v6280_v35  ;;  %v6319_v34 = vld [vmem:[#allocation11 + $0x618] sm:$0xff]   ;;  %v6320_v35 = vld [vmem:[#allocation11 + $0x4f0] sm:$0xff]  }
 0x28e   : > { %5682 = vmatprep.subr.bf16.mxu0 %v6281_v36  ;;  %v6321_v36 = vld [vmem:[#allocation11 + $0x660] sm:$0xff]   ;;  %v3300_v22 = vshll.u32 %v7260_v31, 16 }
 0x290   : > { %5621 = vmatpush3.bf16.msra.mxu1 %v6282_v38  ;;  %v6322_v38 = vld [vmem:[#allocation11 + $0x4b0] sm:$0xff]   ;;  %v3302_v46 = vrot.slane %v3300_v22, 1 }
 0x291   : > { %5683 = vmatpush3.bf16.msra.mxu0 %v6283_v41  ;;  %5622 = vmatprep.subr.bf16.mxu1 %v6284_v43  ;;  %v6323_v41 = vld [vmem:[#allocation11 + $0x620] sm:$0xff]   ;;  %v6324_v43 = vld [vmem:[#allocation11 + $0x4f8] sm:$0xff]  }
 0x292   : > { %5684 = vmatprep.subr.bf16.mxu0 %v6285_v45  ;;  %v6327_v45 = vld [vmem:[#allocation11 + $0x628] sm:$0xff]  }
 0x294   : > { %5623 = vmatpush3.bf16.msra.mxu1 %v6286_v48  ;;  %v6329_v48 = vld [vmem:[#allocation11 + $0x670] sm:$0xff]  }
 0x295   : > { %5685 = vmatpush3.bf16.msra.mxu0 %v6287_v49  ;;  %5624 = vmatprep.subr.bf16.mxu1 %v6288_v50  ;;  %v3298_v49 = vshrl.u32 %v7260_v31, 16  ;;  %v6330_v50 = vld [vmem:[#allocation11 + $0x580] sm:$0xff]  }
 0x296   : > { %5686 = vmatprep.subr.bf16.mxu0 %v6289_v14 }
 0x297   : > { %v3303_v14 = vor.u32 %v3302_v46, %v3298_v49  ;;  %v6377_v46 = vld [vmem:[#allocation11 + $0x6b0] sm:$0xff]  }
 0x298   : > { %5625 = vmatpush3.bf16.msra.mxu1 %v6290_v39  ;;  %v6331_v39 = vld [vmem:[#allocation11 + $0x630] sm:$0xff]  }
 0x299   : > { %5687 = vmatpush3.bf16.msra.mxu0 %v6291_v54  ;;  %5626 = vmatprep.subr.bf16.mxu1 %v6292_v57  ;;  %v6332_v54 = vld [vmem:[#allocation11 + $0x5c8] sm:$0xff]   ;;  %v4176_v57 = vrot.slane %v7162_v9, 1  ;;  %v6340_v9 = vld [vmem:[#allocation11 + $0x5d8] sm:$0xff]  }
 0x29a   : > { %5688 = vmatprep.subr.bf16.mxu0 %v6293_v56  ;;  %v6334_v56 = vld [vmem:[#allocation11 + $0x588] sm:$0xff]  }
 0x29c   : > { %5627 = vmatpush3.bf16.msra.mxu1 %v6294_v61  ;;  %v6336_v61 = vld [vmem:[#allocation11 + $0x5d0] sm:$0xff]  }
 0x29d   : > { %5689 = vmatpush3.bf16.msra.mxu0 %v6295_v16  ;;  %5656 = vmatprep.subr.bf16.mxu1 %v6296_v63  ;;  %v6337_v16 = vld [vmem:[#allocation11 + $0x740] sm:$0xff]  }
 0x29e   : > { %5690 = vmatprep.subr.bf16.mxu0 %v6297_v32  ;;  %v6339_v63 = vld [vmem:[#allocation11 + $0x700] sm:$0xff]   ;;  %v4177_v32 = vrot.slane %v7246_v37, 1  ;;  %v6347_v37 = vld [vmem:[#allocation11 + $0x710] sm:$0xff]  }
 0x29f   : > { %3914 = vmatmul.mubr.bf16.vlgmr.msra.gmra.mrb[24].mxu1 %v3275_v0  ;;  %v6344_v0 = vld [vmem:[#allocation11 + $0x5e0] sm:$0xff]  }
 0x2a0   : > { %5657 = vmatpush3.bf16.msra.mxu1 %v6298_v29  ;;  %3993 = vmatprep.mubr.bf16.mxu1 %v3310_v10  ;;  %v6342_v29 = vld [vmem:[#allocation11 + $0x598] sm:$0xff]   ;;  %v6348_v10 = vld [vmem:[#allocation11 + $0x5e8] sm:$0xff]  }
 0x2a1   : > { %5691 = vmatpush3.bf16.msra.mxu0 %v6299_v7  ;;  %5658 = vmatprep.subr.bf16.mxu1 %v6300_v40  ;;  %v6345_v7 = vld [vmem:[#allocation11 + $0x750] sm:$0xff]   ;;  %v6346_v40 = vld [vmem:[#allocation11 + $0x5a0] sm:$0xff]  }
 0x2a2   : > { %5692 = vmatprep.subr.bf16.mxu0 %v6301_v59  ;;  %v6349_v59 = vld [vmem:[#allocation11 + $0x758] sm:$0xff]  }
 0x2a4   : > { %5659 = vmatpush3.bf16.msra.mxu1 %v6302_v8  ;;  %v6351_v8 = vld [vmem:[#allocation11 + $0x718] sm:$0xff]  }
 0x2a5   : > { %5693 = vmatpush3.bf16.msra.mxu0 %v6303_v33  ;;  %5660 = vmatprep.subr.bf16.mxu1 %v6304_v11  ;;  %v6352_v33 = vld [vmem:[#allocation11 + $0x5f0] sm:$0xff]   ;;  %v6353_v11 = vld [vmem:[#allocation11 + $0x760] sm:$0xff]  }
 0x2a6   : > { %5722 = vmatprep.subr.bf16.mxu0 %v6305_v12  ;;  %v6354_v12 = vld [vmem:[#allocation11 + $0x5b0] sm:$0xff]  }
 0x2a8   : > { %4706 = vmatmul.mubr.bf16.vlgmr.msra.gmra.mrb[28].mxu0 %v4173_v17  ;;  %5661 = vmatpush3.bf16.msra.mxu1 %v6306_v13  ;;  %v6355_v13 = vld [vmem:[#allocation11 + $0x720] sm:$0xff]   ;;  %v6357_v17 = vld [vmem:[#allocation11 + $0x768] sm:$0xff]  }
 0x2a9   : > { %5723 = vmatpush3.bf16.msra.mxu0 %v6307_v15  ;;  %4785 = vmatprep.mubr.bf16.mxu0 %v4178_v20  ;;  %v6356_v15 = vld [vmem:[#allocation11 + $0x5f8] sm:$0xff]   ;;  %v6360_v20 = vld [vmem:[#allocation11 + $0x6c0] sm:$0xff]  }
 0x2aa   : > { %5662 = vmatprep.subr.bf16.mxu1 %v6308_v18  ;;  %5724 = vmatprep.subr.bf16.mxu0 %v6309_v19  ;;  %v6358_v18 = vld [vmem:[#allocation11 + $0x5b8] sm:$0xff]   ;;  %v6359_v19 = vld [vmem:[#allocation11 + $0x728] sm:$0xff]  }
 0x2ac   : > { %5663 = vmatpush3.bf16.msra.mxu1 %v6310_v21  ;;  %v6361_v21 = vld [vmem:[#allocation11 + $0x770] sm:$0xff]  }
 0x2ad   : > { %5725 = vmatpush3.bf16.msra.mxu0 %v6311_v23  ;;  %5664 = vmatprep.subr.bf16.mxu1 %v6312_v24  ;;  %v6362_v23 = vld [vmem:[#allocation11 + $0x680] sm:$0xff]   ;;  %v4175_v24 = vrot.slane %v7200_v6, 1  ;;  %v6370_v6 = vld [vmem:[#allocation11 + $0x6d8] sm:$0xff]  }
 0x2ae   : > { %5726 = vmatprep.subr.bf16.mxu0 %v6313_v26  ;;  %v6363_v26 = vld [vmem:[#allocation11 + $0x730] sm:$0xff]  }
 0x2b0   : > { %5665 = vmatpush3.bf16.msra.mxu1 %v6314_v27  ;;  %v6364_v27 = vld [vmem:[#allocation11 + $0x6c8] sm:$0xff]  }
 0x2b1   : > { %5727 = vmatpush3.bf16.msra.mxu0 %v6315_v52  ;;  %5666 = vmatprep.subr.bf16.mxu1 %v6316_v28  ;;  %v4180_v52 = vrot.slane %v7202_v5, 1  ;;  %v6365_v28 = vld [vmem:[#allocation11 + $0x778] sm:$0xff]  }
 0x2b2   : > { %5728 = vmatprep.subr.bf16.mxu0 %v6317_v30  ;;  %v6368_v30 = vld [vmem:[#allocation11 + $0x6d0] sm:$0xff]   ;;  %v6371_v5 = vld [vmem:[#allocation11 + $0x698] sm:$0xff]  }
 0x2b4   : > { %5667 = vmatpush3.bf16.msra.mxu1 %v6318_v25  ;;  %v6369_v25 = vld [vmem:[#allocation11 + $0x690] sm:$0xff]  }
 0x2b5   : > { %5729 = vmatpush3.bf16.msra.mxu0 %v6319_v34  ;;  %5668 = vmatprep.subr.bf16.mxu1 %v6320_v35  ;;  %v4181_v34 = vrot.slane %v7260_v31, 1  ;;  %v6372_v35 = vld [vmem:[#allocation11 + $0x6e0] sm:$0xff]  }
 0x2b6   : > { %5730 = vmatprep.subr.bf16.mxu0 %v6321_v36  ;;  %v6373_v36 = vld [vmem:[#allocation11 + $0x6a0] sm:$0xff]  }
 0x2b8   : > { %5669 = vmatpush3.bf16.msra.mxu1 %v6322_v38  ;;  %v6374_v38 = vld [vmem:[#allocation11 + $0x6e8] sm:$0xff]  }
 0x2b9   : > { %5731 = vmatpush3.bf16.msra.mxu0 %v6323_v41  ;;  %5670 = vmatprep.subr.bf16.mxu1 %v6324_v43  ;;  %v6375_v41 = vld [vmem:[#allocation11 + $0x6a8] sm:$0xff]   ;;  %v6376_v43 = vld [vmem:[#allocation11 + $0x6f0] sm:$0xff]  }
 0x2ba   : > { %5732 = vmatprep.subr.bf16.mxu0 %v6325_v44 }
 0x2bc   : > { %5671 = vmatpush3.bf16.msra.mxu1 %v6326_v53 }
 0x2bd   : > { %5733 = vmatpush3.bf16.msra.mxu0 %v6327_v45  ;;  %5700 = vmatprep.subr.bf16.mxu1 %v6328_v47  ;;  %v6378_v47 = vld [vmem:[#allocation11 + $0x6f8] sm:$0xff]  }
 0x2be   : > { %5734 = vmatprep.subr.bf16.mxu0 %v6329_v48  ;;  %v6379_v48 = vld [vmem:[#allocation11 + $0x6b8] sm:$0xff]  }
 0x2bf   : > { %3994 = vmatmul.mubr.bf16.vlgmr.msra.gmra.mrb[28].mxu1 %v3303_v14 }
 0x2c0   : > { %5701 = vmatpush3.bf16.msra.mxu1 %v6330_v50  ;;  %4745 = vmatprep.mubr.bf16.mxu1 %v4176_v57  ;;  %v4179_v57 = vrot.slane %v7231_v4, 1 }
 0x2c1   : > { %5735 = vmatpush3.bf16.msra.mxu0 %v6331_v39  ;;  %5702 = vmatprep.subr.bf16.mxu1 %v6332_v54 }
 0x2c2   : > { %5736 = vmatprep.subr.bf16.mxu0 %v6333_v42  ;;  %v5163_v42 = vld [vmem:[#allocation13] ss:$0 sm:$0xff] }
 0x2c4   : > { %5703 = vmatpush3.bf16.msra.mxu1 %v6334_v56 }
 0x2c5   : > { %5737 = vmatpush3.bf16.msra.mxu0 %v6335_v58  ;;  %5704 = vmatprep.subr.bf16.mxu1 %v6336_v61 }
 0x2c6   : > { %5766 = vmatprep.subr.bf16.mxu0 %v6337_v16 }
 0x2c8   : > { %4786 = vmatmul.mubr.bf16.vlgmr.msra.gmra.mrb[32].mxu0 %v4177_v32  ;;  %5705 = vmatpush3.bf16.msra.mxu1 %v6338_v60 }
 0x2c9   : > { %5767 = vmatpush3.bf16.msra.mxu0 %v6339_v63  ;;  %4865 = vmatprep.mubr.bf16.mxu0 %v4182_v2 }
 0x2ca   : > { %5706 = vmatprep.subr.bf16.mxu1 %v6340_v9  ;;  %5768 = vmatprep.subr.bf16.mxu0 %v6341_v1 }
 0x2cc   : > { %5707 = vmatpush3.bf16.msra.mxu1 %v6342_v29 }
 0x2cd   : > { %5769 = vmatpush3.bf16.msra.mxu0 %v6343_v3  ;;  %5708 = vmatprep.subr.bf16.mxu1 %v6344_v0 }
 0x2ce   : > { %5770 = vmatprep.subr.bf16.mxu0 %v6345_v7 }
 0x2d0   : > { %5709 = vmatpush3.bf16.msra.mxu1 %v6346_v40 }
 0x2d1   : > { %5771 = vmatpush3.bf16.msra.mxu0 %v6347_v37  ;;  %5710 = vmatprep.subr.bf16.mxu1 %v6348_v10 }
 0x2d2   : > { %5772 = vmatprep.subr.bf16.mxu0 %v6349_v59 }
 0x2d4   : > { %5711 = vmatpush3.bf16.msra.mxu1 %v6350_v51 }
 0x2d5   : > { %5773 = vmatpush3.bf16.msra.mxu0 %v6351_v8  ;;  %5712 = vmatprep.subr.bf16.mxu1 %v6352_v33 }
 0x2d6   : > { %5774 = vmatprep.subr.bf16.mxu0 %v6353_v11 }
 0x2d8   : > { %5713 = vmatpush3.bf16.msra.mxu1 %v6354_v12 }
 0x2d9   : > { %5775 = vmatpush3.bf16.msra.mxu0 %v6355_v13  ;;  %5714 = vmatprep.subr.bf16.mxu1 %v6356_v15 }
 0x2da   : > { %5776 = vmatprep.subr.bf16.mxu0 %v6357_v17 }
 0x2dc   : > { %5715 = vmatpush3.bf16.msra.mxu1 %v6358_v18 }
 0x2dd   : > { %5777 = vmatpush3.bf16.msra.mxu0 %v6359_v19  ;;  %5744 = vmatprep.subr.bf16.mxu1 %v6360_v20 }
 0x2de   : > { %5778 = vmatprep.subr.bf16.mxu0 %v6361_v21 }
 0x2df   : > { %4746 = vmatmul.mubr.bf16.vlgmr.msra.gmra.mrb[32].mxu1 %v4175_v24 }
 0x2e0   : > { %5745 = vmatpush3.bf16.msra.mxu1 %v6362_v23  ;;  %4825 = vmatprep.mubr.bf16.mxu1 %v4180_v52 }
 0x2e1   : > { %5779 = vmatpush3.bf16.msra.mxu0 %v6363_v26  ;;  %5746 = vmatprep.subr.bf16.mxu1 %v6364_v27 }
 0x2e2   : > { %5780 = vmatprep.subr.bf16.mxu0 %v6365_v28 }
 0x2e4   : > { %5747 = vmatpush3.bf16.msra.mxu1 %v6366_v62 }
 0x2e5   : > { %5781 = vmatpush3.bf16.msra.mxu0 %v6367_v55  ;;  %5748 = vmatprep.subr.bf16.mxu1 %v6368_v30 }
 0x2e8   : > { %4866 = vmatmul.mubr.bf16.vlgmr.msra.gmra.mrb[36].mxu0 %v4181_v34  ;;  %5749 = vmatpush3.bf16.msra.mxu1 %v6369_v25 }
 0x2e9   : > { %5750 = vmatprep.subr.bf16.mxu1 %v6370_v6 }
 0x2ec   : > { %5751 = vmatpush3.bf16.msra.mxu1 %v6371_v5 }
 0x2ed   : > { %5752 = vmatprep.subr.bf16.mxu1 %v6372_v35 }
 0x2f0   : > { %5753 = vmatpush3.bf16.msra.mxu1 %v6373_v36 }
 0x2f1   : > { %5754 = vmatprep.subr.bf16.mxu1 %v6374_v38 }
 0x2f2   : > { %v5474_v22 = vpop.f32.mrb[8].mxu1 }
 0x2f3   : > { %v5475_v44 = vpop.f32.mrb[9].mxu1 }
 0x2f4   : > { %v5476_v53 = vadd.f32 %v5475_v44, %v5474_v22  ;;  %5755 = vmatpush3.bf16.msra.mxu1 %v6375_v41  ;;  %v5477_v45 = vpop.f32.mrb[10].mxu1 }
 0x2f5   : > { %v5478_v31 = vpop.f32.mrb[11].mxu1  ;;  %5756 = vmatprep.subr.bf16.mxu1 %v6376_v43 }
 0x2f6   : > { %v2905_v61 = vadd.f32 %v5476_v53, %v5163_v42 }
 0x2f8   : > { %5757 = vmatpush3.bf16.msra.mxu1 %v6377_v46 }
 0x2f9   : > { %5758 = vmatprep.subr.bf16.mxu1 %v6378_v47 }
 0x2fa   : > { %v5518_v49 = vpop.f32.mrb[12].mxu0 }
 0x2fb   : > { %v5519_v50 = vpop.f32.mrb[13].mxu0 }
 0x2fc   : > { %v5520_v14 = vadd.f32 %v5519_v50, %v5518_v49  ;;  %5759 = vmatpush3.bf16.msra.mxu1 %v6379_v48  ;;  %v5521_v39 = vpop.f32.mrb[14].mxu0 }
 0x2fd   : > { %v5522_v54 = vpop.f32.mrb[15].mxu0 }
 0x2ff   : > { %4826 = vmatmul.mubr.bf16.vlgmr.msra.gmra.mrb[36].mxu1 %v4179_v57 }
 0x312   : > { %v5496_v56 = vpop.f32.mrb[12].mxu1 }
 0x313   : > { %v5497_v58 = vpop.f32.mrb[13].mxu1 }
 0x314   : > { %v5498_v16 = vadd.f32 %v5497_v58, %v5496_v56  ;;  %v5499_v60 = vpop.f32.mrb[14].mxu1 }
 0x315   : > { %v5500_v63 = vpop.f32.mrb[15].mxu1 }
 0x316   : > { %v2945_v32 = vadd.f32 %v5498_v16, %v2905_v61 }
 0x318   : > { %v2985_v9 = vadd.f32 %v5520_v14, %v2945_v32 }
 0x31b   : > { %v5562_v1 = vpop.f32.mrb[16].mxu0 }
 0x31c   : > { %v5563_v2 = vpop.f32.mrb[17].mxu0 }
 0x31d   : > { %v5564_v29 = vadd.f32 %v5563_v2, %v5562_v1  ;;  %v5565_v3 = vpop.f32.mrb[18].mxu0 }
 0x31e   : > { %v5566_v0 = vpop.f32.mrb[19].mxu0 }
 0x332   : > { %v5540_v7 = vpop.f32.mrb[16].mxu1 }
 0x333   : > { %v5541_v40 = vpop.f32.mrb[17].mxu1 }
 0x334   : > { %v5542_v37 = vadd.f32 %v5541_v40, %v5540_v7  ;;  %v5543_v10 = vpop.f32.mrb[18].mxu1 }
 0x335   : > { %v5544_v4 = vpop.f32.mrb[19].mxu1 }
 0x336   : > { %v3025_v59 = vadd.f32 %v5542_v37, %v2985_v9 }
 0x338   : > { %v3065_v51 = vadd.f32 %v5564_v29, %v3025_v59 }
 0x33b   : > { %v5606_v8 = vpop.f32.mrb[20].mxu0 }
 0x33c   : > { %v5607_v33 = vpop.f32.mrb[21].mxu0 }
 0x33d   : > { %v5608_v11 = vadd.f32 %v5607_v33, %v5606_v8  ;;  %v5609_v12 = vpop.f32.mrb[22].mxu0 }
 0x33e   : > { %v5610_v13 = vpop.f32.mrb[23].mxu0 }
 0x352   : > { %v5584_v15 = vpop.f32.mrb[20].mxu1 }
 0x353   : > { %v5585_v17 = vpop.f32.mrb[21].mxu1 }
 0x354   : > { %v5586_v18 = vadd.f32 %v5585_v17, %v5584_v15  ;;  %v5587_v19 = vpop.f32.mrb[22].mxu1 }
 0x355   : > { %v5588_v20 = vpop.f32.mrb[23].mxu1 }
 0x356   : > { %v3876_v21 = vadd.f32 %v5608_v11, %v5586_v18 }
 0x35b   : > { %v5650_v23 = vpop.f32.mrb[24].mxu0 }
 0x35c   : > { %v5651_v24 = vpop.f32.mrb[25].mxu0 }
 0x35d   : > { %v5652_v26 = vadd.f32 %v5651_v24, %v5650_v23  ;;  %v5653_v27 = vpop.f32.mrb[26].mxu0 }
 0x35e   : > { %v5654_v52 = vpop.f32.mrb[27].mxu0 }
 0x372   : > { %v5628_v28 = vpop.f32.mrb[24].mxu1 }
 0x373   : > { %v5629_v62 = vpop.f32.mrb[25].mxu1 }
 0x374   : > { %v5630_v55 = vadd.f32 %v5629_v62, %v5628_v28  ;;  %v5631_v30 = vpop.f32.mrb[26].mxu1 }
 0x375   : > { %v5632_v25 = vpop.f32.mrb[27].mxu1 }
 0x376   : > { %v3916_v6 = vadd.f32 %v5630_v55, %v3876_v21 }
 0x378   : > { %v3956_v34 = vadd.f32 %v5652_v26, %v3916_v6 }
 0x37b   : > { %v5694_v5 = vpop.f32.mrb[28].mxu0 }
 0x37c   : > { %v5695_v35 = vpop.f32.mrb[29].mxu0 }
 0x37d   : > { %v5696_v36 = vadd.f32 %v5695_v35, %v5694_v5  ;;  %v5697_v38 = vpop.f32.mrb[30].mxu0 }
 0x37e   : > { %v5698_v41 = vpop.f32.mrb[31].mxu0 }
 0x392   : > { %v5672_v43 = vpop.f32.mrb[28].mxu1 }
 0x393   : > { %v5673_v22 = vpop.f32.mrb[29].mxu1 }
 0x394   : > { %v5674_v44 = vadd.f32 %v5673_v22, %v5672_v43  ;;  %v5675_v53 = vpop.f32.mrb[30].mxu1 }
 0x395   : > { %v5676_v45 = vpop.f32.mrb[31].mxu1 }
 0x396   : > { %v3996_v46 = vadd.f32 %v5674_v44, %v3956_v34 }
 0x398   : > { %v4001_v31 = vadd.f32 %v3996_v46, %v3065_v51 }
 0x39b   : > { %v5738_v47 = vpop.f32.mrb[32].mxu0 }
 0x39c   : > { %v5739_v48 = vpop.f32.mrb[33].mxu0 }
 0x39d   : > { %v5740_v49 = vadd.f32 %v5739_v48, %v5738_v47  ;;  %v5741_v50 = vpop.f32.mrb[34].mxu0 }
 0x39e   : > { %v5742_v14 = vpop.f32.mrb[35].mxu0 }
 0x3b2   : > { %v5716_v39 = vpop.f32.mrb[32].mxu1 }
 0x3b3   : > { %v5717_v54 = vpop.f32.mrb[33].mxu1 }
 0x3b4   : > { %v5718_v57 = vadd.f32 %v5717_v54, %v5716_v39  ;;  %v5719_v42 = vpop.f32.mrb[34].mxu1 }
 0x3b5   : > { %v5720_v56 = vpop.f32.mrb[35].mxu1 }
 0x3b6   : > { %v4748_v58 = vadd.f32 %v5718_v57, %v5696_v36 }
 0x3b8   : > { %v4788_v61 = vadd.f32 %v5740_v49, %v4748_v58 }
 0x3bb   : > { %v5782_v16 = vpop.f32.mrb[36].mxu0 }
 0x3bc   : > { %v5783_v60 = vpop.f32.mrb[37].mxu0 }
 0x3bd   : > { %v5784_v63 = vadd.f32 %v5783_v60, %v5782_v16  ;;  %v5785_v32 = vpop.f32.mrb[38].mxu0 }
 0x3be   : > { %v5786_v9 = vpop.f32.mrb[39].mxu0 }
 0x3d2   : > { %v5760_v1 = vpop.f32.mrb[36].mxu1 }
 0x3d3   : > { %v5761_v2 = vpop.f32.mrb[37].mxu1 }
 0x3d4   : > { %v5762_v29 = vadd.f32 %v5761_v2, %v5760_v1  ;;  %v5763_v3 = vpop.f32.mrb[38].mxu1 }
 0x3d5   : > { %v5764_v0 = vpop.f32.mrb[39].mxu1 }
 0x3d6   : > { %v4828_v7 = vadd.f32 %v5762_v29, %v4788_v61 }
 0x3d8   : > { %v4868_v40 = vadd.f32 %v5784_v63, %v4828_v7 }
 0x3da   : > { %v4873_v37 = vadd.f32 %v4868_v40, %v4001_v31 }
 0x3dc   : > { %4874 = vst [vmem:[%s372_s12] sm:$0xff] %v4873_v37 }
 0x3dd   : > { %6591 = shalt.err (!%p6588_p0)
}
 0x3de   : > { %s6592_s17 = scalar_lea.hbm %s7276_s23, 128  ;;  %s6596_s10 = scalar_lea.hbm %s7327_s7, 256 }
 0x3df   : > { %p6593_p10 = scmp.ne.s32.totalorder %s7276_s23, %s6592_s17  ;;  %p6597_p8 = scmp.lt.u32.totalorder %s7276_s23, %s7327_s7 }
 0x3e0   : > { %p6598_p5 = scmp.lt.u32.totalorder %s6596_s10, %s6592_s17  ;;  %p6600_p6 = scmp.lt.u32.totalorder %s6592_s17, %s7276_s23 }
 0x3e1   : > { %p6594_p11 = pnand %p6593_p10, %p7351_p9 }
 0x3e2   : > { %p6599_p7 = por %p6598_p5, %p6597_p8 }
 0x3e3   : > { %p6595_p12 = pneg %p6594_p11 }
 0x3e4   : > { %p6601_p4 = por %p6600_p6, %p6599_p7 }
 0x3e6   : > { %p6602_p13 = pnand %p6601_p4, %p6595_p12 }
 0x3e8   : > { %6605 = shalt.err (!%p6602_p13)
}
 0x3e9   : > { %5904 = dma.vmem_to_hbm [thread:$0]  (%p7351_p9), %s7278_s15, 128, %s7276_s23, %s4876_s20  }
 0x3ea PF: > { %s4901_s12 = sand.u32 1, %s6644_s24   ;;  %p7352_p1 = scmp.ne.s32.totalorder %s7340_s21, 0 }
 0x3eb   : > { %p7353_p3 = scmp.ge.s32.totalorder %s6656_s27, 2  ;;  %s4902_s16 = scalar_lea.sflag [#allocation4], %s4901_s12 }
 0x3ed   : > { %p5930_p2 = pnand %p7353_p3, %p7352_p1 }
 0x3ef   : > { %6639 = dma.done.wait (!%p5930_p2), %s4902_s16, 128  }
 0x3f0   : > { %6641 = vsyncadd (!%p5930_p2), %s4902_s16, 4294967168  ;;  %p23_p0 = scmp.ge.s32.totalorder %s6888_s11, 4   ;;  %s7354_s24 = smov %s6648_s25 }
 0x3f1   : > { %s7355_s25 = smov %s6652_s26  ;;  %s7356_s26 = smov %s6899_s18 }
 0x3f2   : > { %s7357_s27 = smov %s6888_s11  ;;  %25 = sbr.rel (!%p23_p0) target bundleno = 10 (0xa), region = 123 }
 0x3f9   :  { %4907 = vsyncpa [#allocation3], 1 }
 0x3fa   :  { %4909 = vsyncpa [#allocation3 + $0x1], 1 }
 0x3fb   :  { %4910 = vsyncpa [#allocation6], 1 }
 0x3fc   :  { %4911 = vsyncpa [#allocation9], 1 }
 0x3fd   :  { %4912 = vsyncpa [#allocation12], 1 }
 0x3fe   :  { %4913 = vsyncpa [#allocation4], 1 }
 0x3ff   :  { %4915 = vsyncpa [#allocation4 + $0x1], 1 }

</bundles_post_ra>
